<compile_context>
chip_gen: v7x
topology: tpu7x:2x2x1
jax: 0.10.0
libtpu: 0.0.40
codegen_flags: <defaults>
</compile_context>

<pallas_src>
import math

import jax
import jax.numpy as jnp
from jax.experimental import pallas as pl
from jax.experimental.pallas import tpu as pltpu

_LN_EPS = 1e-5  # torch.nn.LayerNorm default


def _round_up(x, m):
    return ((x + m - 1) // m) * m


# ---------------------------------------------------------------------------
# Fused VSN kernel (one row-tile per grid step)
# ---------------------------------------------------------------------------
def _make_vsn_kernel(num_inputs, input_dim, hidden_dim, has_context,
                     flat_skip, sv_skip):
    V, D, H = num_inputs, input_dim, hidden_dim
    VH = V * H

    def elu(h):
        return jnp.where(h > 0, h, jnp.exp(jnp.minimum(h, 0.0)) - 1.0)

    def kernel(*refs):
        *in_refs, out_ref, sw_ref = refs
        it = iter(in_refs)
        nxt = lambda: next(it)[...]  # noqa: E731

        x = nxt().astype(jnp.float32)                          # (TM, F)
        ctx = nxt().astype(jnp.float32) if has_context else None

        # ---- VMEM-resident, pre-laid-out f32 parameters ----
        flat_s1_w, flat_s1_b = nxt(), nxt()                    # (F, 2H|H), (1, 2H|H)
        flat_ctx_wt = nxt() if has_context else None           # (C, H)
        flat_fused_w, flat_fused_b = nxt(), nxt()              # (H, V), (1, V)
        flat_ln_g, flat_ln_b = nxt(), nxt()                    # (1, V)
        sv_s1_w, sv_s1_b = nxt(), nxt()                        # (F, 2VH|VH), (1, .)
        sv_fused_w, sv_fused_b = nxt(), nxt()                  # (VH, VH), (1, VH)
        sv_ln_g, sv_ln_b = nxt(), nxt()                        # (1, VH)
        avg_mat, expand_mat, sum_mat = nxt(), nxt(), nxt()     # (VH,VH),(V,VH),(VH,H)

        # -------- flattened GRN -> variable-selection logits --------
        # one matmul for [fc1 | skip]
        t = jnp.dot(x, flat_s1_w, preferred_element_type=jnp.float32) + flat_s1_b
        if flat_skip:
            h, res = t[:, :H], t[:, H:]
        else:
            h, res = t, x
        if has_context:
            h = h + jnp.dot(ctx, flat_ctx_wt, preferred_element_type=jnp.float32)
        h = elu(h)
        # fused fc2 -> dropout(identity) -> GLU linear; GLU output is g*g
        g = jnp.dot(h, flat_fused_w, preferred_element_type=jnp.float32) + flat_fused_b
        # TODO(synk): training-mode dropout would need pltpu.prng_random_bits.
        y = g * g + res
        mean = jnp.mean(y, axis=-1, keepdims=True)
        yc = y - mean
        var = jnp.mean(yc * yc, axis=-1, keepdims=True)
        logits = yc * jax.lax.rsqrt(var + _LN_EPS) * flat_ln_g + flat_ln_b

        # softmax over the variable axis (EUP exp + approx reciprocal)
        mlog = jnp.max(logits, axis=-1, keepdims=True)
        e = jnp.exp(logits - mlog)
        w = e * pl.reciprocal(jnp.sum(e, axis=-1, keepdims=True), approx=True)
        sw_ref[...] = w.astype(sw_ref.dtype)                   # (TM, V)

        # -------- all V per-variable GRNs, block-diagonally batched --------
        t2 = jnp.dot(x, sv_s1_w, preferred_element_type=jnp.float32) + sv_s1_b
        if sv_skip:
            h2, res2 = t2[:, :VH], t2[:, VH:]
        else:
            h2, res2 = t2, x                                   # D == H case
        h2 = elu(h2)
        g2 = jnp.dot(h2, sv_fused_w, preferred_element_type=jnp.float32) + sv_fused_b
        y2 = g2 * g2 + res2                                    # (TM, VH)

        # per-variable LayerNorm via block-averaging matmuls (lane-dense, no reshape)
        mean2 = jnp.dot(y2, avg_mat, preferred_element_type=jnp.float32)
        yc2 = y2 - mean2
        var2 = jnp.dot(yc2 * yc2, avg_mat, preferred_element_type=jnp.float32)
        norm2 = yc2 * jax.lax.rsqrt(var2 + _LN_EPS) * sv_ln_g + sv_ln_b

        # weighted combine over variables: lane-replicate w, multiply, strided sum
        w_rep = jnp.dot(w, expand_mat, preferred_element_type=jnp.float32)   # (TM, VH)
        out = jnp.dot(norm2 * w_rep, sum_mat, preferred_element_type=jnp.float32)
        out_ref[...] = out.astype(out_ref.dtype)               # (TM, H)

    return kernel


# ---------------------------------------------------------------------------
# Parameters: nn.Linear layout + one-time kernel-layout preparation
# ---------------------------------------------------------------------------
def init_vsn_params(key, input_dim, num_inputs, hidden_dim, context_dim=None,
                    dtype=jnp.float32):
    """Parameters in nn.Linear layout ((out, in) weights), mirroring the module."""
    D, V, H, C = input_dim, num_inputs, hidden_dim, context_dim
    F = V * D
    keys = iter(jax.random.split(key, 256))

    def linear(out_d, in_d, bias=True):
        w = jax.random.normal(next(keys), (out_d, in_d), dtype) * (in_d ** -0.5)
        b = jax.random.normal(next(keys), (out_d,), dtype) * 0.1 if bias else None
        return w, b

    def layer_norm(dim):
        g = 1.0 + 0.05 * jax.random.normal(next(keys), (dim,), dtype)
        b = 0.05 * jax.random.normal(next(keys), (dim,), dtype)
        return g, b

    def grn_params(in_d, hid_d, out_d, with_context):
        p = {}
        if in_d != out_d:  # project_residual: skip projects to hidden_dim (as written)
            p["skip_w"], p["skip_b"] = linear(hid_d, in_d)
        p["fc1_w"], p["fc1_b"] = linear(hid_d, in_d)
        if with_context:
            p["ctx_w"], _ = linear(hid_d, C, bias=False)
        p["fc2_w"], p["fc2_b"] = linear(out_d, hid_d)
        p["glu_w"], p["glu_b"] = linear(out_d, out_d)  # GLU.fc2 (fc1 is dead code)
        p["ln_g"], p["ln_b"] = layer_norm(out_d)
        return p

    flat = grn_params(F, H, V, with_context=C is not None)
    sv = [grn_params(D, H, H, with_context=False) for _ in range(V)]
    return {"flat": flat, "sv": sv, "dims": (D, V, H, C)}


def prepare_kernel_params(params):
    """One-time conversion to fused kernel layout (hoisted out of the forward pass):
    (in, out)-transposed f32 weights, fc2+GLU fused, skip+fc1 concatenated,
    per-variable GRNs packed block-diagonally, constant structural matrices."""
    D, V, H, C = params["dims"]
    F, VH = V * D, V * H
    flat, sv = params["flat"], params["sv"]
    hi = jax.lax.Precision.HIGHEST
    f32 = lambda a: jnp.asarray(a, jnp.float32)  # noqa: E731

    def fuse_fc2_glu(p):
        fw, fb = f32(p["fc2_w"]).T, f32(p["fc2_b"])
        gw, gb = f32(p["glu_w"]).T, f32(p["glu_b"])
        return (jnp.dot(fw, gw, precision=hi),
                jnp.dot(fb, gw, precision=hi) + gb)

    def blockdiag(mats, rows, cols):
        out = jnp.zeros((V * rows, V * cols), jnp.float32)
        for i, m in enumerate(mats):
            out = out.at[i * rows:(i + 1) * rows, i * cols:(i + 1) * cols].set(m)
        return out

    k = {"dims": params["dims"]}

    # ---- flattened GRN ----
    flat_skip = "skip_w" in flat
    fc1_wt = f32(flat["fc1_w"]).T                                   # (F, H)
    if flat_skip:
        k["flat_stage1_w"] = jnp.concatenate([fc1_wt, f32(flat["skip_w"]).T], axis=1)
        k["flat_stage1_b"] = jnp.concatenate([f32(flat["fc1_b"]),
                                              f32(flat["skip_b"])])[None, :]
    else:
        k["flat_stage1_w"] = fc1_wt
        k["flat_stage1_b"] = f32(flat["fc1_b"])[None, :]
    if "ctx_w" in flat:
        k["flat_ctx_wt"] = f32(flat["ctx_w"]).T                     # (C, H)
    fused_w, fused_b = fuse_fc2_glu(flat)
    k["flat_fused_w"] = fused_w                                     # (H, V)
    k["flat_fused_b"] = fused_b[None, :]
    k["flat_ln_g"] = f32(flat["ln_g"])[None, :]
    k["flat_ln_b"] = f32(flat["ln_b"])[None, :]
    k["flat_skip"] = flat_skip

    # ---- per-variable GRNs, batched block-diagonally ----
    sv_skip = "skip_w" in sv[0]
    sv_fc1_bd = blockdiag([f32(p["fc1_w"]).T for p in sv], D, H)     # (F, VH)
    sv_fc1_b = jnp.concatenate([f32(p["fc1_b"]) for p in sv])
    if sv_skip:
        sv_skip_bd = blockdiag([f32(p["skip_w"]).T for p in sv], D, H)
        sv_skip_b = jnp.concatenate([f32(p["skip_b"]) for p in sv])
        k["sv_stage1_w"] = jnp.concatenate([sv_fc1_bd, sv_skip_bd], axis=1)  # (F, 2VH)
        k["sv_stage1_b"] = jnp.concatenate([sv_fc1_b, sv_skip_b])[None, :]
    else:
        k["sv_stage1_w"] = sv_fc1_bd
        k["sv_stage1_b"] = sv_fc1_b[None, :]
    fused = [fuse_fc2_glu(p) for p in sv]
    k["sv_fused_w"] = blockdiag([fw for fw, _ in fused], H, H)       # (VH, VH)
    k["sv_fused_b"] = jnp.concatenate([fb for _, fb in fused])[None, :]
    k["sv_ln_g"] = jnp.concatenate([f32(p["ln_g"]) for p in sv])[None, :]
    k["sv_ln_b"] = jnp.concatenate([f32(p["ln_b"]) for p in sv])[None, :]
    k["sv_skip"] = sv_skip

    # ---- constant structural matrices ----
    k["avg_mat"] = blockdiag([jnp.full((H, H), 1.0 / H, jnp.float32)] * V, H, H)
    k["expand_mat"] = blockdiag([jnp.ones((1, H), jnp.float32)] * V, 1, H)   # (V, VH)
    k["sum_mat"] = jnp.concatenate([jnp.eye(H, dtype=jnp.float32)] * V, axis=0)  # (VH, H)
    return k


# ---------------------------------------------------------------------------
# Forward wrapper
# ---------------------------------------------------------------------------
def vsn_forward(flattened_embedding, kparams, context=None, *, tile_m=2048):
    """VariableSelectionNetwork forward (eval mode).

    flattened_embedding: (M, num_inputs * input_dim), f32 or bf16
    context:             optional (M, context_dim)
    Returns (outputs (M, hidden_dim), sparse_weights (M, num_inputs, 1)).
    """
    D, V, H, C = kparams["dims"]
    F = V * D
    x = flattened_embedding
    M, f_in = x.shape
    assert f_in == F, f"expected last dim {F}, got {f_in}"
    has_context = context is not None
    if has_context:
        assert C is not None and context.shape == (M, C)

    flat_skip = bool(kparams["flat_skip"])
    sv_skip = bool(kparams["sv_skip"])
    if flat_skip:
        # Reference flattened GRN adds a hidden_dim-wide residual to a
        # num_inputs-wide gate output; fail loudly on mismatched configs.
        assert H == V, "VariableSelectionNetwork requires hidden_dim == num_inputs"

    # Row tile: large to amortize per-step overhead; capped so the grid keeps
    # >= 2 steps (v7x megacore can split the 'parallel' axis); multiple of 8.
    tm = min(tile_m, _round_up(pl.cdiv(M, 2), 8))
    tm = _round_up(max(8, tm), 8)
    grid = (pl.cdiv(M, tm),)

    operands = [x]
    in_specs = [pl.BlockSpec((tm, F), lambda i: (i, 0))]
    if has_context:
        operands.append(context)
        in_specs.append(pl.BlockSpec((tm, C), lambda i: (i, 0)))

    def add_resident(arr):
        # Constant index_map -> block never changes, so Pallas keeps the
        # parameter VMEM-resident across the whole grid (loaded once).
        operands.append(arr)
        in_specs.append(pl.BlockSpec(arr.shape, lambda i, _n=arr.ndim: (0,) * _n))

    # Order below must match the kernel's read order.
    add_resident(kparams["flat_stage1_w"]); add_resident(kparams["flat_stage1_b"])
    if has_context:
        add_resident(kparams["flat_ctx_wt"])
    for name in ("flat_fused_w", "flat_fused_b", "flat_ln_g", "flat_ln_b",
                 "sv_stage1_w", "sv_stage1_b", "sv_fused_w", "sv_fused_b",
                 "sv_ln_g", "sv_ln_b", "avg_mat", "expand_mat", "sum_mat"):
        add_resident(kparams[name])

    out_dtype = x.dtype
    out_shape = (jax.ShapeDtypeStruct((M, H), out_dtype),
                 jax.ShapeDtypeStruct((M, V), out_dtype))
    out_specs = [pl.BlockSpec((tm, H), lambda i: (i, 0)),
                 pl.BlockSpec((tm, V), lambda i: (i, 0))]

    kernel = _make_vsn_kernel(V, D, H, has_context, flat_skip, sv_skip)

    # Advisory cost estimate so XLA can overlap this kernel with neighbours.
    VH = V * H
    itemsize = jnp.dtype(out_dtype).itemsize
    flat_s1_cols = 2 * H if flat_skip else H
    sv_s1_cols = 2 * VH if sv_skip else VH
    flops_row = (2 * F * flat_s1_cols + (2 * C * H if has_context else 0)
                 + 2 * H * V                      # flat fused fc2+glu
                 + 2 * F * sv_s1_cols             # sv stage-1 block-diag
                 + 2 * VH * VH                    # sv fused fc2+glu
                 + 4 * VH * VH                    # two block-averaging matmuls
                 + 2 * V * VH + 2 * VH * H)       # expand + strided sum
    trans_row = H + VH + V + 2 + V                # ELUs + softmax + rsqrts
    bytes_accessed = (sum(int(math.prod(a.shape)) * jnp.dtype(a.dtype).itemsize
                          for a in operands)
                      + (M * H + M * V) * itemsize)
    cost = pl.CostEstimate(flops=int(M * flops_row),
                           transcendentals=int(M * trans_row),
                           bytes_accessed=int(bytes_accessed))

    outputs, weights = pl.pallas_call(
        kernel,
        out_shape=out_shape,
        grid_spec=pl.GridSpec(grid=grid, in_specs=in_specs, out_specs=out_specs),
        compiler_params=pltpu.CompilerParams(
            dimension_semantics=("parallel",)),   # v7x: rows split across 2 TCs
        cost_estimate=cost,
    )(*operands)

    return outputs, weights[:, :, None]           # sparse_weights: (M, V, 1)


# ---------------------------------------------------------------------------
# Pure-JAX reference (mirrors the PyTorch module, eval mode)
# ---------------------------------------------------------------------------
def _linear_ref(x, w, b=None):
    y = jnp.dot(x, w.T, precision=jax.lax.Precision.HIGHEST)
    return y if b is None else y + b


def _grn_ref(x, p, context=None):
    residual = _linear_ref(x, p["skip_w"], p["skip_b"]) if "skip_w" in p else x
    h = _linear_ref(x, p["fc1_w"], p["fc1_b"])
    if context is not None:
        h = h + _linear_ref(context, p["ctx_w"])
    h = jnp.where(h > 0, h, jnp.exp(jnp.minimum(h, 0.0)) - 1.0)  # ELU
    y = _linear_ref(h, p["fc2_w"], p["fc2_b"])
    g = _linear_ref(y, p["glu_w"], p["glu_b"])
    y = g * g + residual                                         # GLU as written
    mean = jnp.mean(y, axis=-1, keepdims=True)
    var = jnp.mean(jnp.square(y - mean), axis=-1, keepdims=True)
    return (y - mean) * jax.lax.rsqrt(var + _LN_EPS) * p["ln_g"] + p["ln_b"]


def _vsn_reference(x, raw_params, context=None):
    D, V, _, _ = raw_params["dims"]
    logits = _grn_ref(x, raw_params["flat"], context)
    w = jax.nn.softmax(logits, axis=1)
    sparse_weights = w[:, :, None]                               # (M, V, 1)
    processed = jnp.stack(
        [_grn_ref(x[:, i * D:(i + 1) * D], raw_params["sv"][i]) for i in range(V)],
        axis=-1)                                                 # (M, H, V)
    outputs = jnp.sum(processed * jnp.transpose(sparse_weights, (0, 2, 1)), axis=-1)
    return outputs, sparse_weights


if __name__ == "__main__":
    key = jax.random.PRNGKey(0)
    # Small TFT-like config. hidden_dim must equal num_inputs (asserted).
    batch, seq = 4, 32
    input_dim, num_inputs, hidden_dim, context_dim = 16, 8, 8, 16
    num_rows = batch * seq                        # module operates on flattened rows
    flat_dim = num_inputs * input_dim

    k_x, k_c, k_p = jax.random.split(key, 3)
    x = jax.random.normal(k_x, (num_rows, flat_dim), dtype=jnp.float32)
    ctx = jax.random.normal(k_c, (num_rows, context_dim), dtype=jnp.float32)

    raw = init_vsn_params(k_p, input_dim, num_inputs, hidden_dim, context_dim)
    kparams = prepare_kernel_params(raw)          # one-time fused kernel layout

    # --- with context ---
    out, sw = vsn_forward(x, kparams, ctx)
    out = jax.block_until_ready(out)
    sw = jax.block_until_ready(sw)
    assert out.shape == (num_rows, hidden_dim)
    assert sw.shape == (num_rows, num_inputs, 1)
    ref_out, ref_sw = _vsn_reference(x, raw, ctx)
    assert jnp.allclose(out, ref_out, atol=3e-3, rtol=3e-3), \
        float(jnp.max(jnp.abs(out - ref_out)))
    assert jnp.allclose(sw, ref_sw, atol=3e-3, rtol=3e-3), \
        float(jnp.max(jnp.abs(sw - ref_sw)))

    # --- without context (context=None path) ---
    out_nc, sw_nc = vsn_forward(x, kparams, None)
    jax.block_until_ready(out_nc)
    ref_out_nc, ref_sw_nc = _vsn_reference(x, raw, None)
    assert jnp.allclose(out_nc, ref_out_nc, atol=3e-3, rtol=3e-3)
    assert jnp.allclose(sw_nc, ref_sw_nc, atol=3e-3, rtol=3e-3)

    # --- row count not divisible by the tile (partial last block) ---
    m_tail = 72
    out_t, sw_t = vsn_forward(x[:m_tail], kparams, ctx[:m_tail])
    jax.block_until_ready(out_t)
    ref_out_t, ref_sw_t = _vsn_reference(x[:m_tail], raw, ctx[:m_tail])
    assert jnp.allclose(out_t, ref_out_t, atol=3e-3, rtol=3e-3)
    assert jnp.allclose(sw_t, ref_sw_t, atol=3e-3, rtol=3e-3)

    # --- bf16 activations (halves the dominant HBM read stream) ---
    x_bf, ctx_bf = x.astype(jnp.bfloat16), ctx.astype(jnp.bfloat16)
    out_bf, sw_bf = vsn_forward(x_bf, kparams, ctx_bf)
    jax.block_until_ready(out_bf)
    ref_out_bf, ref_sw_bf = _vsn_reference(
        x_bf.astype(jnp.float32), raw, ctx_bf.astype(jnp.float32))
    assert jnp.allclose(out_bf.astype(jnp.float32), ref_out_bf, atol=2e-2, rtol=2e-2)
    assert jnp.allclose(sw_bf.astype(jnp.float32), ref_sw_bf, atol=2e-2, rtol=2e-2)

    print("KERNEL_OK")
</pallas_src>

<mosaic_0001>
module attributes {stable_mosaic.version = 11 : i64} {
  func.func @kernel(%arg0: i32, %arg1: memref<64x128xf32, #tpu.memory_space<vmem>>, %arg2: memref<64x16xf32, #tpu.memory_space<vmem>>, %arg3: memref<128x16xf32, #tpu.memory_space<vmem>>, %arg4: memref<1x16xf32, #tpu.memory_space<vmem>>, %arg5: memref<16x8xf32, #tpu.memory_space<vmem>>, %arg6: memref<8x8xf32, #tpu.memory_space<vmem>>, %arg7: memref<1x8xf32, #tpu.memory_space<vmem>>, %arg8: memref<1x8xf32, #tpu.memory_space<vmem>>, %arg9: memref<1x8xf32, #tpu.memory_space<vmem>>, %arg10: memref<128x128xf32, #tpu.memory_space<vmem>>, %arg11: memref<1x128xf32, #tpu.memory_space<vmem>>, %arg12: memref<64x64xf32, #tpu.memory_space<vmem>>, %arg13: memref<1x64xf32, #tpu.memory_space<vmem>>, %arg14: memref<1x64xf32, #tpu.memory_space<vmem>>, %arg15: memref<1x64xf32, #tpu.memory_space<vmem>>, %arg16: memref<64x64xf32, #tpu.memory_space<vmem>>, %arg17: memref<8x64xf32, #tpu.memory_space<vmem>>, %arg18: memref<64x8xf32, #tpu.memory_space<vmem>>, %arg19: memref<64x8xf32, #tpu.memory_space<vmem>>, %arg20: memref<64x8xf32, #tpu.memory_space<vmem>>) attributes {dimension_semantics = [#tpu.dimension_semantics<parallel>], iteration_bounds = array<i64: 2>, scalar_prefetch = 0 : i64, scratch_operands = 0 : i64, tpu.core_type = #tpu.core_type<tc>, window_params = [{transform_indices = @transform_0, window_bounds = array<i64: 64, 128>}, {transform_indices = @transform_1, window_bounds = array<i64: 64, 16>}, {pipeline_mode = #tpu.pipeline_mode<synchronous>, transform_indices = @transform_2, window_bounds = array<i64: 128, 16>}, {pipeline_mode = #tpu.pipeline_mode<synchronous>, transform_indices = @transform_3, window_bounds = array<i64: 1, 16>}, {pipeline_mode = #tpu.pipeline_mode<synchronous>, transform_indices = @transform_4, window_bounds = array<i64: 16, 8>}, {pipeline_mode = #tpu.pipeline_mode<synchronous>, transform_indices = @transform_5, window_bounds = array<i64: 8, 8>}, {pipeline_mode = #tpu.pipeline_mode<synchronous>, transform_indices = @transform_6, window_bounds = array<i64: 1, 8>}, {pipeline_mode = #tpu.pipeline_mode<synchronous>, transform_indices = @transform_7, window_bounds = array<i64: 1, 8>}, {pipeline_mode = #tpu.pipeline_mode<synchronous>, transform_indices = @transform_8, window_bounds = array<i64: 1, 8>}, {pipeline_mode = #tpu.pipeline_mode<synchronous>, transform_indices = @transform_9, window_bounds = array<i64: 128, 128>}, {pipeline_mode = #tpu.pipeline_mode<synchronous>, transform_indices = @transform_10, window_bounds = array<i64: 1, 128>}, {pipeline_mode = #tpu.pipeline_mode<synchronous>, transform_indices = @transform_11, window_bounds = array<i64: 64, 64>}, {pipeline_mode = #tpu.pipeline_mode<synchronous>, transform_indices = @transform_12, window_bounds = array<i64: 1, 64>}, {pipeline_mode = #tpu.pipeline_mode<synchronous>, transform_indices = @transform_13, window_bounds = array<i64: 1, 64>}, {pipeline_mode = #tpu.pipeline_mode<synchronous>, transform_indices = @transform_14, window_bounds = array<i64: 1, 64>}, {pipeline_mode = #tpu.pipeline_mode<synchronous>, transform_indices = @transform_15, window_bounds = array<i64: 64, 64>}, {pipeline_mode = #tpu.pipeline_mode<synchronous>, transform_indices = @transform_16, window_bounds = array<i64: 8, 64>}, {pipeline_mode = #tpu.pipeline_mode<synchronous>, transform_indices = @transform_17, window_bounds = array<i64: 64, 8>}, {transform_indices = @transform_18, window_bounds = array<i64: 64, 8>}, {transform_indices = @transform_19, window_bounds = array<i64: 64, 8>}]} {
    %c0 = arith.constant 0 : index
    %c0_0 = arith.constant 0 : index
    %0 = vector.load %arg1[%c0, %c0_0] : memref<64x128xf32, #tpu.memory_space<vmem>>, vector<64x128xf32>
    %c0_1 = arith.constant 0 : index
    %c0_2 = arith.constant 0 : index
    %1 = vector.load %arg2[%c0_1, %c0_2] : memref<64x16xf32, #tpu.memory_space<vmem>>, vector<64x16xf32>
    %c0_3 = arith.constant 0 : index
    %c0_4 = arith.constant 0 : index
    %2 = vector.load %arg3[%c0_3, %c0_4] : memref<128x16xf32, #tpu.memory_space<vmem>>, vector<128x16xf32>
    %c0_5 = arith.constant 0 : index
    %c0_6 = arith.constant 0 : index
    %3 = vector.load %arg4[%c0_5, %c0_6] : memref<1x16xf32, #tpu.memory_space<vmem>>, vector<1x16xf32>
    %c0_7 = arith.constant 0 : index
    %c0_8 = arith.constant 0 : index
    %4 = vector.load %arg5[%c0_7, %c0_8] : memref<16x8xf32, #tpu.memory_space<vmem>>, vector<16x8xf32>
    %c0_9 = arith.constant 0 : index
    %c0_10 = arith.constant 0 : index
    %5 = vector.load %arg6[%c0_9, %c0_10] : memref<8x8xf32, #tpu.memory_space<vmem>>, vector<8x8xf32>
    %c0_11 = arith.constant 0 : index
    %c0_12 = arith.constant 0 : index
    %6 = vector.load %arg7[%c0_11, %c0_12] : memref<1x8xf32, #tpu.memory_space<vmem>>, vector<1x8xf32>
    %c0_13 = arith.constant 0 : index
    %c0_14 = arith.constant 0 : index
    %7 = vector.load %arg8[%c0_13, %c0_14] : memref<1x8xf32, #tpu.memory_space<vmem>>, vector<1x8xf32>
    %c0_15 = arith.constant 0 : index
    %c0_16 = arith.constant 0 : index
    %8 = vector.load %arg9[%c0_15, %c0_16] : memref<1x8xf32, #tpu.memory_space<vmem>>, vector<1x8xf32>
    %c0_17 = arith.constant 0 : index
    %c0_18 = arith.constant 0 : index
    %9 = vector.load %arg10[%c0_17, %c0_18] : memref<128x128xf32, #tpu.memory_space<vmem>>, vector<128x128xf32>
    %c0_19 = arith.constant 0 : index
    %c0_20 = arith.constant 0 : index
    %10 = vector.load %arg11[%c0_19, %c0_20] : memref<1x128xf32, #tpu.memory_space<vmem>>, vector<1x128xf32>
    %c0_21 = arith.constant 0 : index
    %c0_22 = arith.constant 0 : index
    %11 = vector.load %arg12[%c0_21, %c0_22] : memref<64x64xf32, #tpu.memory_space<vmem>>, vector<64x64xf32>
    %c0_23 = arith.constant 0 : index
    %c0_24 = arith.constant 0 : index
    %12 = vector.load %arg13[%c0_23, %c0_24] : memref<1x64xf32, #tpu.memory_space<vmem>>, vector<1x64xf32>
    %c0_25 = arith.constant 0 : index
    %c0_26 = arith.constant 0 : index
    %13 = vector.load %arg14[%c0_25, %c0_26] : memref<1x64xf32, #tpu.memory_space<vmem>>, vector<1x64xf32>
    %c0_27 = arith.constant 0 : index
    %c0_28 = arith.constant 0 : index
    %14 = vector.load %arg15[%c0_27, %c0_28] : memref<1x64xf32, #tpu.memory_space<vmem>>, vector<1x64xf32>
    %c0_29 = arith.constant 0 : index
    %c0_30 = arith.constant 0 : index
    %15 = vector.load %arg16[%c0_29, %c0_30] : memref<64x64xf32, #tpu.memory_space<vmem>>, vector<64x64xf32>
    %c0_31 = arith.constant 0 : index
    %c0_32 = arith.constant 0 : index
    %16 = vector.load %arg17[%c0_31, %c0_32] : memref<8x64xf32, #tpu.memory_space<vmem>>, vector<8x64xf32>
    %c0_33 = arith.constant 0 : index
    %c0_34 = arith.constant 0 : index
    %17 = vector.load %arg18[%c0_33, %c0_34] : memref<64x8xf32, #tpu.memory_space<vmem>>, vector<64x8xf32>
    %cst = arith.constant dense<0.000000e+00> : vector<64x16xf32>
    %18 = tpu.matmul %0, %2, %cst {dimension_numbers = #tpu.dot_dimension_numbers<[1], [0], [0], [1], [0, 0, 1, 1], [], []>} : vector<64x128xf32>, vector<128x16xf32>, vector<64x16xf32> -> vector<64x16xf32>
    %19 = vector.broadcast %3 : vector<1x16xf32> to vector<64x16xf32>
    %20 = arith.addf %18, %19 : vector<64x16xf32>
    %21 = vector.extract_strided_slice %20 {offsets = [0, 0], sizes = [64, 8], strides = [1, 1]} : vector<64x16xf32> to vector<64x8xf32>
    %22 = vector.extract_strided_slice %20 {offsets = [0, 8], sizes = [64, 8], strides = [1, 1]} : vector<64x16xf32> to vector<64x8xf32>
    %cst_35 = arith.constant dense<0.000000e+00> : vector<64x8xf32>
    %23 = tpu.matmul %1, %4, %cst_35 {dimension_numbers = #tpu.dot_dimension_numbers<[1], [0], [0], [1], [0, 0, 1, 1], [], []>} : vector<64x16xf32>, vector<16x8xf32>, vector<64x8xf32> -> vector<64x8xf32>
    %24 = arith.addf %21, %23 : vector<64x8xf32>
    %cst_36 = arith.constant 0.000000e+00 : f32
    %25 = vector.broadcast %cst_36 : f32 to vector<64x8xf32>
    %26 = arith.cmpf ogt, %24, %25 : vector<64x8xf32>
    %cst_37 = arith.constant 0.000000e+00 : f32
    %27 = vector.broadcast %cst_37 : f32 to vector<64x8xf32>
    %28 = arith.minimumf %24, %27 : vector<64x8xf32>
    %29 = math.exp %28 : vector<64x8xf32>
    %cst_38 = arith.constant 1.000000e+00 : f32
    %30 = vector.broadcast %cst_38 : f32 to vector<64x8xf32>
    %31 = arith.subf %29, %30 : vector<64x8xf32>
    %32 = arith.select %26, %24, %31 : vector<64x8xi1>, vector<64x8xf32>
    %cst_39 = arith.constant dense<0.000000e+00> : vector<64x8xf32>
    %33 = tpu.matmul %32, %5, %cst_39 {dimension_numbers = #tpu.dot_dimension_numbers<[1], [0], [0], [1], [0, 0, 1, 1], [], []>} : vector<64x8xf32>, vector<8x8xf32>, vector<64x8xf32> -> vector<64x8xf32>
    %34 = vector.broadcast %6 : vector<1x8xf32> to vector<64x8xf32>
    %35 = arith.addf %33, %34 : vector<64x8xf32>
    %36 = arith.mulf %35, %35 : vector<64x8xf32>
    %37 = arith.addf %36, %22 : vector<64x8xf32>
    %cst_40 = arith.constant dense<0.000000e+00> : vector<64xf32>
    %38 = vector.multi_reduction <add>, %37, %cst_40 [1] : vector<64x8xf32> to vector<64xf32>
    %39 = vector.shape_cast %38 : vector<64xf32> to vector<64x1xf32>
    %cst_41 = arith.constant 8.000000e+00 : f32
    %40 = vector.broadcast %cst_41 : f32 to vector<64x1xf32>
    %41 = arith.divf %39, %40 : vector<64x1xf32>
    %42 = vector.broadcast %41 : vector<64x1xf32> to vector<64x8xf32>
    %43 = arith.subf %37, %42 : vector<64x8xf32>
    %44 = arith.mulf %43, %43 : vector<64x8xf32>
    %cst_42 = arith.constant dense<0.000000e+00> : vector<64xf32>
    %45 = vector.multi_reduction <add>, %44, %cst_42 [1] : vector<64x8xf32> to vector<64xf32>
    %46 = vector.shape_cast %45 : vector<64xf32> to vector<64x1xf32>
    %cst_43 = arith.constant 8.000000e+00 : f32
    %47 = vector.broadcast %cst_43 : f32 to vector<64x1xf32>
    %48 = arith.divf %46, %47 : vector<64x1xf32>
    %cst_44 = arith.constant 9.99999974E-6 : f32
    %49 = vector.broadcast %cst_44 : f32 to vector<64x1xf32>
    %50 = arith.addf %48, %49 : vector<64x1xf32>
    %51 = math.rsqrt %50 : vector<64x1xf32>
    %52 = vector.broadcast %51 : vector<64x1xf32> to vector<64x8xf32>
    %53 = arith.mulf %43, %52 : vector<64x8xf32>
    %54 = vector.broadcast %7 : vector<1x8xf32> to vector<64x8xf32>
    %55 = arith.mulf %53, %54 : vector<64x8xf32>
    %56 = vector.broadcast %8 : vector<1x8xf32> to vector<64x8xf32>
    %57 = arith.addf %55, %56 : vector<64x8xf32>
    %cst_45 = arith.constant dense<0xFF800000> : vector<64xf32>
    %58 = vector.multi_reduction <maximumf>, %57, %cst_45 [1] : vector<64x8xf32> to vector<64xf32>
    %59 = vector.shape_cast %58 : vector<64xf32> to vector<64x1xf32>
    %60 = vector.broadcast %59 : vector<64x1xf32> to vector<64x8xf32>
    %61 = arith.subf %57, %60 : vector<64x8xf32>
    %62 = math.exp %61 : vector<64x8xf32>
    %cst_46 = arith.constant dense<0.000000e+00> : vector<64xf32>
    %63 = vector.multi_reduction <add>, %62, %cst_46 [1] : vector<64x8xf32> to vector<64xf32>
    %64 = vector.shape_cast %63 : vector<64xf32> to vector<64x1xf32>
    %65 = tpu.reciprocal %64 {approx = true} : vector<64x1xf32> -> vector<64x1xf32>
    %66 = vector.broadcast %65 : vector<64x1xf32> to vector<64x8xf32>
    %67 = arith.mulf %62, %66 : vector<64x8xf32>
    %c0_47 = arith.constant 0 : index
    %c0_48 = arith.constant 0 : index
    %68 = vector.load %arg20[%c0_47, %c0_48] : memref<64x8xf32, #tpu.memory_space<vmem>>, vector<64x8xf32>
    tpu.vector_store %arg20[%c0_47, %c0_48], %67 {strides = array<i32>} : memref<64x8xf32, #tpu.memory_space<vmem>>, vector<64x8xf32>,
    %cst_49 = arith.constant dense<0.000000e+00> : vector<64x128xf32>
    %69 = tpu.matmul %0, %9, %cst_49 {dimension_numbers = #tpu.dot_dimension_numbers<[1], [0], [0], [1], [0, 0, 1, 1], [], []>} : vector<64x128xf32>, vector<128x128xf32>, vector<64x128xf32> -> vector<64x128xf32>
    %70 = vector.broadcast %10 : vector<1x128xf32> to vector<64x128xf32>
    %71 = arith.addf %69, %70 : vector<64x128xf32>
    %72 = vector.extract_strided_slice %71 {offsets = [0, 0], sizes = [64, 64], strides = [1, 1]} : vector<64x128xf32> to vector<64x64xf32>
    %73 = vector.extract_strided_slice %71 {offsets = [0, 64], sizes = [64, 64], strides = [1, 1]} : vector<64x128xf32> to vector<64x64xf32>
    %cst_50 = arith.constant 0.000000e+00 : f32
    %74 = vector.broadcast %cst_50 : f32 to vector<64x64xf32>
    %75 = arith.cmpf ogt, %72, %74 : vector<64x64xf32>
    %cst_51 = arith.constant 0.000000e+00 : f32
    %76 = vector.broadcast %cst_51 : f32 to vector<64x64xf32>
    %77 = arith.minimumf %72, %76 : vector<64x64xf32>
    %78 = math.exp %77 : vector<64x64xf32>
    %cst_52 = arith.constant 1.000000e+00 : f32
    %79 = vector.broadcast %cst_52 : f32 to vector<64x64xf32>
    %80 = arith.subf %78, %79 : vector<64x64xf32>
    %81 = arith.select %75, %72, %80 : vector<64x64xi1>, vector<64x64xf32>
    %cst_53 = arith.constant dense<0.000000e+00> : vector<64x64xf32>
    %82 = tpu.matmul %81, %11, %cst_53 {dimension_numbers = #tpu.dot_dimension_numbers<[1], [0], [0], [1], [0, 0, 1, 1], [], []>} : vector<64x64xf32>, vector<64x64xf32>, vector<64x64xf32> -> vector<64x64xf32>
    %83 = vector.broadcast %12 : vector<1x64xf32> to vector<64x64xf32>
    %84 = arith.addf %82, %83 : vector<64x64xf32>
    %85 = arith.mulf %84, %84 : vector<64x64xf32>
    %86 = arith.addf %85, %73 : vector<64x64xf32>
    %cst_54 = arith.constant dense<0.000000e+00> : vector<64x64xf32>
    %87 = tpu.matmul %86, %15, %cst_54 {dimension_numbers = #tpu.dot_dimension_numbers<[1], [0], [0], [1], [0, 0, 1, 1], [], []>} : vector<64x64xf32>, vector<64x64xf32>, vector<64x64xf32> -> vector<64x64xf32>
    %88 = arith.subf %86, %87 : vector<64x64xf32>
    %89 = arith.mulf %88, %88 : vector<64x64xf32>
    %cst_55 = arith.constant dense<0.000000e+00> : vector<64x64xf32>
    %90 = tpu.matmul %89, %15, %cst_55 {dimension_numbers = #tpu.dot_dimension_numbers<[1], [0], [0], [1], [0, 0, 1, 1], [], []>} : vector<64x64xf32>, vector<64x64xf32>, vector<64x64xf32> -> vector<64x64xf32>
    %cst_56 = arith.constant 9.99999974E-6 : f32
    %91 = vector.broadcast %cst_56 : f32 to vector<64x64xf32>
    %92 = arith.addf %90, %91 : vector<64x64xf32>
    %93 = math.rsqrt %92 : vector<64x64xf32>
    %94 = arith.mulf %88, %93 : vector<64x64xf32>
    %95 = vector.broadcast %13 : vector<1x64xf32> to vector<64x64xf32>
    %96 = arith.mulf %94, %95 : vector<64x64xf32>
    %97 = vector.broadcast %14 : vector<1x64xf32> to vector<64x64xf32>
    %98 = arith.addf %96, %97 : vector<64x64xf32>
    %cst_57 = arith.constant dense<0.000000e+00> : vector<64x64xf32>
    %99 = tpu.matmul %67, %16, %cst_57 {dimension_numbers = #tpu.dot_dimension_numbers<[1], [0], [0], [1], [0, 0, 1, 1], [], []>} : vector<64x8xf32>, vector<8x64xf32>, vector<64x64xf32> -> vector<64x64xf32>
    %100 = arith.mulf %98, %99 : vector<64x64xf32>
    %cst_58 = arith.constant dense<0.000000e+00> : vector<64x8xf32>
    %101 = tpu.matmul %100, %17, %cst_58 {dimension_numbers = #tpu.dot_dimension_numbers<[1], [0], [0], [1], [0, 0, 1, 1], [], []>} : vector<64x64xf32>, vector<64x8xf32>, vector<64x8xf32> -> vector<64x8xf32>
    %c0_59 = arith.constant 0 : index
    %c0_60 = arith.constant 0 : index
    %102 = vector.load %arg19[%c0_59, %c0_60] : memref<64x8xf32, #tpu.memory_space<vmem>>, vector<64x8xf32>
    tpu.vector_store %arg19[%c0_59, %c0_60], %101 {strides = array<i32>} : memref<64x8xf32, #tpu.memory_space<vmem>>, vector<64x8xf32>,
    return
  }
  func.func @transform_0(%arg0: i32) -> (i32, i32) {
    %c0_i32 = arith.constant 0 : i32
    %c0_i32_0 = arith.constant 0 : i32
    return %arg0, %c0_i32 : i32, i32
  }
  func.func @transform_1(%arg0: i32) -> (i32, i32) {
    %c0_i32 = arith.constant 0 : i32
    %c0_i32_0 = arith.constant 0 : i32
    return %arg0, %c0_i32 : i32, i32
  }
  func.func @transform_2(%arg0: i32) -> (i32, i32) {
    %c0_i32 = arith.constant 0 : i32
    %c0_i32_0 = arith.constant 0 : i32
    %c0_i32_1 = arith.constant 0 : i32
    return %c0_i32, %c0_i32_0 : i32, i32
  }
  func.func @transform_3(%arg0: i32) -> (i32, i32) {
    %c0_i32 = arith.constant 0 : i32
    %c0_i32_0 = arith.constant 0 : i32
    %c0_i32_1 = arith.constant 0 : i32
    return %c0_i32, %c0_i32_0 : i32, i32
  }
  func.func @transform_4(%arg0: i32) -> (i32, i32) {
    %c0_i32 = arith.constant 0 : i32
    %c0_i32_0 = arith.constant 0 : i32
    %c0_i32_1 = arith.constant 0 : i32
    return %c0_i32, %c0_i32_0 : i32, i32
  }
  func.func @transform_5(%arg0: i32) -> (i32, i32) {
    %c0_i32 = arith.constant 0 : i32
    %c0_i32_0 = arith.constant 0 : i32
    %c0_i32_1 = arith.constant 0 : i32
    return %c0_i32, %c0_i32_0 : i32, i32
  }
  func.func @transform_6(%arg0: i32) -> (i32, i32) {
    %c0_i32 = arith.constant 0 : i32
    %c0_i32_0 = arith.constant 0 : i32
    %c0_i32_1 = arith.constant 0 : i32
    return %c0_i32, %c0_i32_0 : i32, i32
  }
  func.func @transform_7(%arg0: i32) -> (i32, i32) {
    %c0_i32 = arith.constant 0 : i32
    %c0_i32_0 = arith.constant 0 : i32
    %c0_i32_1 = arith.constant 0 : i32
    return %c0_i32, %c0_i32_0 : i32, i32
  }
  func.func @transform_8(%arg0: i32) -> (i32, i32) {
    %c0_i32 = arith.constant 0 : i32
    %c0_i32_0 = arith.constant 0 : i32
    %c0_i32_1 = arith.constant 0 : i32
    return %c0_i32, %c0_i32_0 : i32, i32
  }
  func.func @transform_9(%arg0: i32) -> (i32, i32) {
    %c0_i32 = arith.constant 0 : i32
    %c0_i32_0 = arith.constant 0 : i32
    %c0_i32_1 = arith.constant 0 : i32
    return %c0_i32, %c0_i32_0 : i32, i32
  }
  func.func @transform_10(%arg0: i32) -> (i32, i32) {
    %c0_i32 = arith.constant 0 : i32
    %c0_i32_0 = arith.constant 0 : i32
    %c0_i32_1 = arith.constant 0 : i32
    return %c0_i32, %c0_i32_0 : i32, i32
  }
  func.func @transform_11(%arg0: i32) -> (i32, i32) {
    %c0_i32 = arith.constant 0 : i32
    %c0_i32_0 = arith.constant 0 : i32
    %c0_i32_1 = arith.constant 0 : i32
    return %c0_i32, %c0_i32_0 : i32, i32
  }
  func.func @transform_12(%arg0: i32) -> (i32, i32) {
    %c0_i32 = arith.constant 0 : i32
    %c0_i32_0 = arith.constant 0 : i32
    %c0_i32_1 = arith.constant 0 : i32
    return %c0_i32, %c0_i32_0 : i32, i32
  }
  func.func @transform_13(%arg0: i32) -> (i32, i32) {
    %c0_i32 = arith.constant 0 : i32
    %c0_i32_0 = arith.constant 0 : i32
    %c0_i32_1 = arith.constant 0 : i32
    return %c0_i32, %c0_i32_0 : i32, i32
  }
  func.func @transform_14(%arg0: i32) -> (i32, i32) {
    %c0_i32 = arith.constant 0 : i32
    %c0_i32_0 = arith.constant 0 : i32
    %c0_i32_1 = arith.constant 0 : i32
    return %c0_i32, %c0_i32_0 : i32, i32
  }
  func.func @transform_15(%arg0: i32) -> (i32, i32) {
    %c0_i32 = arith.constant 0 : i32
    %c0_i32_0 = arith.constant 0 : i32
    %c0_i32_1 = arith.constant 0 : i32
    return %c0_i32, %c0_i32_0 : i32, i32
  }
  func.func @transform_16(%arg0: i32) -> (i32, i32) {
    %c0_i32 = arith.constant 0 : i32
    %c0_i32_0 = arith.constant 0 : i32
    %c0_i32_1 = arith.constant 0 : i32
    return %c0_i32, %c0_i32_0 : i32, i32
  }
  func.func @transform_17(%arg0: i32) -> (i32, i32) {
    %c0_i32 = arith.constant 0 : i32
    %c0_i32_0 = arith.constant 0 : i32
    %c0_i32_1 = arith.constant 0 : i32
    return %c0_i32, %c0_i32_0 : i32, i32
  }
  func.func @transform_18(%arg0: i32) -> (i32, i32) {
    %c0_i32 = arith.constant 0 : i32
    %c0_i32_0 = arith.constant 0 : i32
    return %arg0, %c0_i32 : i32, i32
  }
  func.func @transform_19(%arg0: i32) -> (i32, i32) {
    %c0_i32 = arith.constant 0 : i32
    %c0_i32_0 = arith.constant 0 : i32
    return %arg0, %c0_i32 : i32, i32
  }
}

</mosaic_0001>

<bundles_post_ra>
// kernel: tpu_custom_call.1
= control target key start
LH: loop header
LB: loop body
LE: loop exit
PB: predicated region body
PF: predicated region fallthrough
CT: control target
= control target key end

     0   :  { %s4081_s0 = inlined_call_operand.vmem [shape: f32[128,128], index: 0, kind: input, shape index: {}]   ;;  %s4082_s1 = inlined_call_operand.vmem [shape: f32[128,16], index: 1, kind: input, shape index: {}]   ;;  %s4083_s2 = inlined_call_operand.vmem [shape: f32[128,16], index: 2, kind: input, shape index: {}]   ;;  %s4084_s3 = inlined_call_operand.vmem [shape: f32[1,16], index: 3, kind: input, shape index: {}]   ;;  %s4085_s4 = inlined_call_operand.vmem [shape: f32[16,8], index: 4, kind: input, shape index: {}]   ;;  %s4086_s5 = inlined_call_operand.vmem [shape: f32[8,8], index: 5, kind: input, shape index: {}]   ;;  %s4087_s6 = inlined_call_operand.vmem [shape: f32[1,8], index: 6, kind: input, shape index: {}]   ;;  %s4088_s7 = inlined_call_operand.hbm [shape: f32[1,8], index: 7, kind: input, shape index: {}]   ;;  %s4089_s8 = inlined_call_operand.vmem [shape: f32[1,8], index: 8, kind: input, shape index: {}]   ;;  %s4090_s9 = inlined_call_operand.vmem [shape: f32[128,128], index: 9, kind: input, shape index: {}]   ;;  %s4091_s10 = inlined_call_operand.vmem [shape: f32[1,128], index: 10, kind: input, shape index: {}]   ;;  %s4092_s11 = inlined_call_operand.vmem [shape: f32[64,64], index: 11, kind: input, shape index: {}]   ;;  %s4093_s12 = inlined_call_operand.vmem [shape: f32[1,64], index: 12, kind: input, shape index: {}]   ;;  %s4094_s13 = inlined_call_operand.vmem [shape: f32[1,64], index: 13, kind: input, shape index: {}]   ;;  %s4095_s14 = inlined_call_operand.vmem [shape: f32[1,64], index: 14, kind: input, shape index: {}]   ;;  %s4096_s15 = inlined_call_operand.vmem [shape: f32[64,64], index: 15, kind: input, shape index: {}]   ;;  %s4097_s16 = inlined_call_operand.vmem [shape: f32[8,64], index: 16, kind: input, shape index: {}]   ;;  %s4098_s17 = inlined_call_operand.vmem [shape: f32[64,8], index: 17, kind: input, shape index: {}]   ;;  %s4099_s18 = inlined_call_operand.vmem [shape: f32[128,8], index: 18, kind: output, shape index: {0}]   ;;  %s4100_s19 = inlined_call_operand.vmem [shape: f32[128,8], index: 19, kind: output, shape index: {1}]  }
   0x1   :  { %4105 = sst [smem:[#allocation5_spill]] %s4081_s0 }
   0x2   :  { %4106 = sst [smem:[#allocation6_spill]] %s4082_s1 }
   0x3   :  { %4107 = sst [smem:[#allocation7_spill]] %s4083_s2 }
   0x4   :  { %4108 = sst [smem:[#allocation8_spill]] %s4084_s3 }
   0x5   :  { %4109 = sst [smem:[#allocation9_spill]] %s4088_s7 }
   0x6   :  { %25 = vsyncpa [#allocation3], 0  ;;  %s3371_s0 = smov 0  }
   0x7 LB: > { %s2498_s30 = sadd.s32 4294967295, %s3266_s0   ;;  %p2500_p0 = scmp.ge.s32.totalorder %s3266_s0, 1  ;;  %s3266_s0 = sphi %s3371_s0, %s31_s0  }
   0x8   : > { %p476_p1 = scmp.lt.s32.totalorder %s3266_s0, 3  ;;  %p3385_p3 = scmp.eq.s32.totalorder %s2498_s30, 0 }
   0x9   : > { %s3268_s1 = smov [#allocation2]   ;;  %s4113_s7 = sld [smem:[#allocation9_spill]] }
   0xa   : > { %p3379_p2 = pnand %p2500_p0, %p476_p1  ;;  %s504_s22 = sshll.u32 %s3268_s1, 4  ;;  %s505_s22 = int_to_ptr.vmem [resolvable:$true] %s504_s22 }
   0xb   : > { %s4111_s21 = scalar_select %p3385_p3, 1, 0 }
   0xc   : > { %s4110_s20 = scalar_select %p3379_p2, 1, 0 }
   0xd   : > { %p3115_p4 = pneg %p3379_p2 }
   0xf   : > { %p3393_p5 = pnand %p3385_p3, %p3115_p4  ;;  %s3228_s25 = scalar_lea.hbm %s4113_s7, 16 }
  0x10   : > { %p3229_p6 = scmp.ne.s32.totalorder %s4113_s7, %s3228_s25  ;;  %p3235_p10 = scmp.lt.u32.totalorder %s3228_s25, %s4113_s7 }
  0x11   : > { %p3230_p7 = pneg %p3393_p5 }
  0x13   : > { %p3231_p8 = pnand %p3230_p7, %p3229_p6 }
  0x15   : > { %p3232_p9 = pneg %p3231_p8 }
  0x17   : > { %p3237_p11 = pnand %p3235_p10, %p3232_p9 }
  0x19   : > { %3240 = shalt.err (!%p3237_p11)
}
  0x1a   : > { %s3241_s29 = scalar_lea.vmem %s505_s22, 16  ;;  %s3248_s1 = scalar_lea.vmem %s505_s22, 32 }
  0x1b   : > { %p3242_p12 = scmp.ne.s32.totalorder %s505_s22, %s3241_s29  ;;  %p3249_p1 = scmp.lt.s32.totalorder %s505_s22, %s505_s22 }
  0x1c   : > { %p3250_p4 = scmp.lt.s32.totalorder %s3248_s1, %s3241_s29 }
  0x1d   : > { %p3244_p13 = pnand %p3242_p12, %p3230_p7 }
  0x1e   : > { %p3251_p3 = por %p3250_p4, %p3249_p1 }
  0x1f   : > { %p3245_p0 = pneg %p3244_p13 }
  0x21   : > { %p3252_p2 = pnand %p3251_p3, %p3245_p0 }
  0x23   : > { %3255 = shalt.err (!%p3252_p2)
}
  0x24   : > { %3118 = dma.hbm_to_vmem [thread:$0]  (!%p3393_p5), %s4113_s7, 16, %s505_s22, [#allocation3]  }
  0x25   : > { %p4114_p6 = scmp.ne.s32.totalorder %s4110_s20, 0 }
  0x26   : > { %p4115_p8 = scmp.ne.s32.totalorder (!%p4114_p6), %s4111_s21, 0 }
  0x27   : > { %565 = sbr.rel (%p4114_p6) target bundleno = 1617 (0x651), region = 92 }
  0x2e   : > { %3261 = dma.done.wait (%p4115_p8), [#allocation3], 16  }
  0x2f   : > { %3263 = vsyncadd (%p4115_p8), [#allocation3], 4294967280  ;;  %s2505_s25 = sshll.u32 %s2498_s30, 3  ;;  %s4116_s26 = sld [smem:[#allocation7_spill]]  ;;  %vm850_vm0 = vcmask 130048   ;;  %v688_v10 = vld [vmem:[%s4085_s4] sm:$0xff] }
  0x30   : > { %p632_p3 = scmp.lt.s32.totalorder %s2505_s25, 15  ;;  %s4117_s27 = sld [smem:[#allocation5_spill]]  ;;  %v689_v11 = vld [vmem:[%s4085_s4 + $0x8] sm:$0xff]  ;;  %v690_v43 = vld [vmem:[%s4086_s5] sm:$0xff]  ;;  %vm1042_vm1 = vcmask 64512   ;;  %vm1614_vm12 = vcmask 523264  }
  0x31   : > { %s4118_s7 = sld [smem:[#allocation6_spill]]  ;;  %v3011_v13 = vpack.c.bf16 %v689_v11, %v688_v10  ;;  %v694_v44 = vld [vmem:[%s4090_s9] sm:$0xff]  ;;  %v695_v45 = vld [vmem:[%s4090_s9 + $0x8] sm:$0xff]  ;;  %s3269_s20 = smov 120  }
  0x32   : > { %s4121_s25 = smov (!%p632_p3, %s2505_s25), 15  ;;  %v3546_v46 = vpack.c.bf16 %v695_v45, %v694_v44  ;;  %v697_v44 = vld [vmem:[%s4090_s9 + $0x18] sm:$0xff] }
  0x33   : > { %s3430_s29 = sshll.u32 %s4121_s25, 3  ;;  %3012 = vmatprep.subr.bf16.mxu1 %v3011_v13 }
  0x34   : > { %3014 = vmatpush3.bf16.msra.mxu1 %v3011_v13  ;;  %s4004_s2 = scalar_lea.vmem %s4100_s19, %s3430_s29  ;;  %s647_s24 = scalar_lea.vmem %s4099_s18, %s3430_s29 }
  0x35   : > { %v671_v0 = vld [vmem:[%s4116_s26] sm:$0xff]  ;;  %v672_v1 = vld [vmem:[%s4116_s26 + $0x8] sm:$0xff]  ;;  %v673_v2 = vld [vmem:[%s4116_s26 + $0x10] sm:$0xff]  ;;  %2795 = vmatprep.subr.mxu1 %v690_v43 }
  0x36   : > { %v2979_v3 = vpack.c.bf16 %v672_v1, %v671_v0  ;;  %v674_v4 = vld [vmem:[%s4116_s26 + $0x18] sm:$0xff]  ;;  %v675_v6 = vld [vmem:[%s4116_s26 + $0x20] sm:$0xff]  ;;  %v676_v7 = vld [vmem:[%s4116_s26 + $0x28] sm:$0xff]  ;;  %s3445_s22 = scalar_lea.vmem %s4117_s27, %s3430_s29  ;;  %s4119_s27 = sld [smem:[#allocation8_spill]] }
  0x37   : > { %v2983_v5 = vpack.c.bf16 %v674_v4, %v673_v2  ;;  %s3451_s30 = scalar_lea.vmem %s4118_s7, %s3430_s29  ;;  %v2987_v8 = vpack.c.bf16 %v676_v7, %v675_v6  ;;  %v677_v9 = vld [vmem:[%s4116_s26 + $0x30] sm:$0xff]  ;;  %v678_v12 = vld [vmem:[%s4116_s26 + $0x38] sm:$0xff]  ;;  %v3466_v14 = vld [vmem:[%s3445_s22] sm:$0xff] }
  0x38   : > { %2980 = vmatprep.subr.bf16.mxu0 %v2979_v3  ;;  %v663_v15 = vld [vmem:[%s3451_s30] sm:$0xff]  ;;  %2767 = vmatprep.mubr.f32.mxu0 %v3466_v14  ;;  %v2991_v16 = vpack.c.bf16 %v678_v12, %v677_v9  ;;  %v664_v17 = vld [vmem:[%s3451_s30 + $0x8] sm:$0xff]  ;;  %v665_v20 = vld [vmem:[%s3451_s30 + $0x10] sm:$0xff] }
  0x39   : > { %2982 = vmatpush3.bf16.msra.mxu0 %v2979_v3  ;;  %2783 = vmatprep.mubr.msk.f32.mxu1 %vm850_vm0, %v663_v15  ;;  %v679_v18 = vld [vmem:[%s4116_s26 + $0x40] sm:$0xff]  ;;  %v680_v19 = vld [vmem:[%s4116_s26 + $0x48] sm:$0xff]  ;;  %v666_v22 = vld [vmem:[%s3451_s30 + $0x18] sm:$0xff] }
  0x3a   : > { %2984 = vmatprep.subr.bf16.mxu0 %v2983_v5  ;;  %2784 = vmatmul.mubr.msk.f32.vlgmr.msra.gmra.mrb[0].mxu1 %vm850_vm0, %v664_v17  ;;  %v2995_v21 = vpack.c.bf16 %v680_v19, %v679_v18  ;;  %v681_v23 = vld [vmem:[%s4116_s26 + $0x50] sm:$0xff]  ;;  %v682_v24 = vld [vmem:[%s4116_s26 + $0x58] sm:$0xff]  ;;  %v667_v25 = vld [vmem:[%s3451_s30 + $0x20] sm:$0xff] }
  0x3b   : > { %2786 = vmatprep.mubr.msk.f32.mxu1 %vm850_vm0, %v665_v20  ;;  %v2999_v26 = vpack.c.bf16 %v682_v24, %v681_v23  ;;  %v668_v27 = vld [vmem:[%s3451_s30 + $0x28] sm:$0xff]  ;;  %v683_v28 = vld [vmem:[%s4116_s26 + $0x60] sm:$0xff]  ;;  %v669_v30 = vld [vmem:[%s3451_s30 + $0x30] sm:$0xff]  ;;  %2796 = vmatpush3.msra.mxu1 %v690_v43 }
  0x3c   : > { %v684_v29 = vld [vmem:[%s4116_s26 + $0x68] sm:$0xff]  ;;  %v670_v32 = vld [vmem:[%s3451_s30 + $0x38] sm:$0xff]  ;;  %v685_v33 = vld [vmem:[%s4116_s26 + $0x70] sm:$0xff]  ;;  %3016 = vmatprep.subr.bf16.mxu1 %v3546_v46 }
  0x3d   : > { %2986 = vmatpush3.bf16.msra.mxu0 %v2983_v5  ;;  %v3003_v31 = vpack.c.bf16 %v684_v29, %v683_v28  ;;  %v686_v34 = vld [vmem:[%s4116_s26 + $0x78] sm:$0xff]  ;;  %v3510_v36 = vld [vmem:[%s3445_s22 + $0x8] sm:$0xff]  ;;  %v3513_v37 = vld [vmem:[%s3445_s22 + $0x10] sm:$0xff] }
  0x3e   : > { %2988 = vmatprep.subr.bf16.mxu0 %v2987_v8  ;;  %2787 = vmatmul.mubr.msk.f32.gmra.mrb[2].mxu1 %vm850_vm0, %v666_v22  ;;  %v3007_v35 = vpack.c.bf16 %v686_v34, %v685_v33  ;;  %v3518_v38 = vld [vmem:[%s3445_s22 + $0x18] sm:$0xff]  ;;  %v3521_v39 = vld [vmem:[%s3445_s22 + $0x20] sm:$0xff]  ;;  %v3526_v40 = vld [vmem:[%s3445_s22 + $0x28] sm:$0xff] }
  0x3f   : > { %2789 = vmatprep.mubr.msk.f32.mxu1 %vm850_vm0, %v667_v25  ;;  %v3529_v41 = vld [vmem:[%s3445_s22 + $0x30] sm:$0xff]  ;;  %v3534_v42 = vld [vmem:[%s3445_s22 + $0x38] sm:$0xff]  ;;  %v2513_v55 = vld [vmem:[%s4119_s27] ss:$0 sm:$0xff]  ;;  %s3270_s22 = smov 64  }
  0x40   : > { %v696_v43 = vld [vmem:[%s4090_s9 + $0x10] sm:$0xff] }
  0x41   : > { %2990 = vmatpush3.bf16.msra.mxu0 %v2987_v8 }
  0x42   : > { %2992 = vmatprep.subr.bf16.mxu0 %v2991_v16  ;;  %2790 = vmatmul.mubr.msk.f32.gmra.mrb[4].mxu1 %vm850_vm0, %v668_v27 }
  0x43   : > { %2792 = vmatprep.mubr.msk.f32.mxu1 %vm850_vm0, %v669_v30 }
  0x45   : > { %2994 = vmatpush3.bf16.msra.mxu0 %v2991_v16 }
  0x46   : > { %2996 = vmatprep.subr.bf16.mxu0 %v2995_v21  ;;  %2793 = vmatmul.mubr.msk.f32.gmra.mrb[6].mxu1 %vm850_vm0, %v670_v32 }
  0x49   : > { %2998 = vmatpush3.bf16.msra.mxu0 %v2995_v21 }
  0x4a   : > { %3000 = vmatprep.subr.bf16.mxu0 %v2999_v26 }
  0x4d   : > { %3002 = vmatpush3.bf16.msra.mxu0 %v2999_v26 }
  0x4e   : > { %3004 = vmatprep.subr.bf16.mxu0 %v3003_v31 }
  0x51   : > { %3006 = vmatpush3.bf16.msra.mxu0 %v3003_v31 }
  0x52   : > { %3008 = vmatprep.subr.bf16.mxu0 %v3007_v35 }
  0x55   : > { %3010 = vmatpush3.bf16.msra.mxu0 %v3007_v35 }
  0x58   : > { %2768 = vmatmul.mubr.f32.vlgmr.msra.gmra.mrb[0].mxu0 %v3510_v36 }
  0x59   : > { %2770 = vmatprep.mubr.f32.mxu0 %v3513_v37 }
  0x5c   : > { %2771 = vmatmul.mubr.f32.gmra.mrb[2].mxu0 %v3518_v38 }
  0x5d   : > { %2773 = vmatprep.mubr.f32.mxu0 %v3521_v39 }
  0x60   : > { %2774 = vmatmul.mubr.f32.gmra.mrb[4].mxu0 %v3526_v40 }
  0x61   : > { %2776 = vmatprep.mubr.f32.mxu0 %v3529_v41 }
  0x64   : > { %2777 = vmatmul.mubr.f32.gmra.mrb[6].mxu0 %v3534_v42 }
 0x10d   : > { %v2785_v47 = vpop.f32.mrb[0].mxu1 }
 0x10e   : > { %v941_v48 = vpop.f32.mrb[1].mxu1 }
 0x111   : > { %v2788_v49 = vpop.f32.mrb[2].mxu1 }
 0x112   : > { %v951_v50 = vpop.f32.mrb[3].mxu1 }
 0x115   : > { %v2791_v51 = vpop.f32.mrb[4].mxu1 }
 0x116   : > { %v961_v52 = vpop.f32.mrb[5].mxu1 }
 0x119   : > { %v2794_v53 = vpop.f32.mrb[6].mxu1 }
 0x11a   : > { %v971_v54 = vpop.f32.mrb[7].mxu1 }
 0x12b   : > { %v2769_v56 = vpop.f32.mrb[0].mxu0 }
 0x12c   : > { %v817_v57 = vadd.f32 %v2769_v56, %v2513_v55  ;;  %v811_v58 = vpop.f32.mrb[1].mxu0 }
 0x12d   : > { %v812_v59 = vadd.f32 %v2513_v55, %v811_v58 }
 0x12e   : > { %v3552_v60 = vadd.f32 %v2785_v47, %v817_v57 }
 0x12f   : > { %v3554_v61 = vadd.f32 %v941_v48, %v812_v59  ;;  %v2772_v62 = vpop.f32.mrb[2].mxu0  ;;  %1188 = vrot.lane.b32.xlu0 %v812_v59, %s3269_s20 }
 0x130   : > { %v997_v63 = vmin.f32 %v3552_v60, 0.0  ;;  %v827_v0 = vadd.f32 %v2772_v62, %v2513_v55  ;;  %v821_v1 = vpop.f32.mrb[3].mxu0  ;;  %vm989_vm3 = vcmp.gt.f32.partialorder %v3552_v60, 0.0  ;;  %v700_v62 = vld [vmem:[%s4090_s9 + $0x30] sm:$0xff] }
 0x131   : > { %v996_v2 = vmin.f32 %v3554_v61, 0.0  ;;  %v822_v3 = vadd.f32 %v2513_v55, %v821_v1  ;;  %vm988_vm2 = vcmp.gt.f32.partialorder %v3554_v61, 0.0 }
 0x132   : > { %v1006_v4 = vmul.f32 1.442695, %v997_v63  ;;  %v3559_v5 = vadd.f32 %v2788_v49, %v827_v0  ;;  %v3019_v49 = vpack.c.bf16 %v697_v44, %v696_v43 }
 0x133   : > { %v1004_v6 = vmul.f32 1.442695, %v996_v2  ;;  %v3561_v7 = vadd.f32 %v951_v50, %v822_v3  ;;  %v2775_v8 = vpop.f32.mrb[4].mxu0  ;;  %1192 = vrot.lane.b32.xlu1 %v822_v3, %s3269_s20  ;;  %1190 = vrot.lane.b32.xlu0 %v817_v57, %s3269_s20 }
 0x134   : > { %3132 = vpow2.f32 %v1006_v4  ;;  %v999_v9 = vmin.f32 %v3559_v5, 0.0  ;;  %v837_v10 = vadd.f32 %v2775_v8, %v2513_v55  ;;  %v831_v11 = vpop.f32.mrb[5].mxu0  ;;  %vm991_vm5 = vcmp.gt.f32.partialorder %v3559_v5, 0.0 }
 0x135   : > { %3134 = vpow2.f32 %v1004_v6  ;;  %v998_v12 = vmin.f32 %v3561_v7, 0.0  ;;  %v832_v13 = vadd.f32 %v2513_v55, %v831_v11  ;;  %vm990_vm4 = vcmp.gt.f32.partialorder %v3561_v7, 0.0  ;;  %v702_v6 = vld [vmem:[%s4090_s9 + $0x40] sm:$0xff] }
 0x136   : > { %v1010_v15 = vmul.f32 1.442695, %v999_v9  ;;  %v3567_v16 = vadd.f32 %v2791_v51, %v837_v10 }
 0x137   : > { %v1008_v17 = vmul.f32 1.442695, %v998_v12  ;;  %v3569_v18 = vadd.f32 %v961_v52, %v832_v13  ;;  %v2778_v19 = vpop.f32.mrb[6].mxu0  ;;  %1194 = vrot.lane.b32.xlu1 %v827_v0, %s3269_s20  ;;  %1196 = vrot.lane.b32.xlu0 %v832_v13, %s3269_s20  ;;  %v704_v12 = vld [vmem:[%s4090_s9 + $0x50] sm:$0xff]  ;;  %v705_v13 = vld [vmem:[%s4090_s9 + $0x58] sm:$0xff] }
 0x138   : > { %3136 = vpow2.f32 %v1010_v15  ;;  %v1001_v20 = vmin.f32 %v3567_v16, 0.0  ;;  %v847_v21 = vadd.f32 %v2778_v19, %v2513_v55  ;;  %v841_v22 = vpop.f32.mrb[7].mxu0  ;;  %vm993_vm7 = vcmp.gt.f32.partialorder %v3567_v16, 0.0  ;;  %v708_v19 = vld [vmem:[%s4090_s9 + $0x70] sm:$0xff] }
 0x139   : > { %3138 = vpow2.f32 %v1008_v17  ;;  %v1000_v23 = vmin.f32 %v3569_v18, 0.0  ;;  %v842_v24 = vadd.f32 %v2513_v55, %v841_v22  ;;  %vm992_vm6 = vcmp.gt.f32.partialorder %v3569_v18, 0.0  ;;  %v707_v17 = vld [vmem:[%s4090_s9 + $0x68] sm:$0xff] }
 0x13a   : > { %v1014_v25 = vmul.f32 1.442695, %v1001_v20  ;;  %v3575_v26 = vadd.f32 %v2794_v53, %v847_v21  ;;  %v698_v53 = vld [vmem:[%s4090_s9 + $0x20] sm:$0xff]  ;;  %v3035_v15 = vpack.c.bf16 %v705_v13, %v704_v12 }
 0x13b   : > { %v1012_v27 = vmul.f32 1.442695, %v1000_v23  ;;  %v3577_v28 = vadd.f32 %v971_v54, %v842_v24  ;;  %1198 = vrot.lane.b32.xlu1 %v837_v10, %s3269_s20  ;;  %1200 = vrot.lane.b32.xlu0 %v842_v24, %s3269_s20  ;;  %v699_v54 = vld [vmem:[%s4090_s9 + $0x28] sm:$0xff]  ;;  %v717_v23 = vld [vmem:[%s4092_s11 + $0x30] sm:$0xff] }
 0x13c   : > { %3140 = vpow2.f32 %v1014_v25  ;;  %v1003_v29 = vmin.f32 %v3575_v26, 0.0  ;;  %v3023_v58 = vpack.c.bf16 %v699_v54, %v698_v53  ;;  %vm995_vm9 = vcmp.gt.f32.partialorder %v3575_v26, 0.0  ;;  %v718_v24 = vld [vmem:[%s4092_s11 + $0x38] sm:$0xff] }
 0x13d   : > { %3142 = vpow2.f32 %v1012_v27  ;;  %v1002_v30 = vmin.f32 %v3577_v28, 0.0  ;;  %vm994_vm8 = vcmp.gt.f32.partialorder %v3577_v28, 0.0  ;;  %v3059_v25 = vpack.c.bf16 %v718_v24, %v717_v23  ;;  %v2530_v27 = vld [vmem:[%s4087_s6] ss:$0 sm:$0xff] }
 0x13e   : > { %v3133_v31 = vpop.eup %3132  ;;  %v1018_v32 = vmul.f32 1.442695, %v1003_v29 }
 0x13f   : > { %v3135_v33 = vpop.eup %3134  ;;  %v2523_v34 = vadd.f32 -1.0, %v3133_v31  ;;  %v1016_v35 = vmul.f32 1.442695, %v1002_v30  ;;  %1202 = vrot.lane.b32.xlu1 %v847_v21, %s3269_s20  ;;  %v711_v21 = vld [vmem:[%s4092_s11] sm:$0xff] }
 0x140   : > { %3144 = vpow2.f32 %v1018_v32  ;;  %v2522_v45 = vadd.f32 -1.0, %v3135_v33 }
 0x141   : > { %3146 = vpow2.f32 %v1016_v35  ;;  %v1029_v51 = vsel %vm989_vm3, %v3552_v60, %v2523_v34 }
 0x142   : > { %v3137_v47 = vpop.eup %3136  ;;  %v1028_v48 = vsel %vm988_vm2, %v3554_v61, %v2522_v45 }
 0x143   : > { %v3139_v50 = vpop.eup %3138  ;;  %2797 = vmatprep.mubr.msk.f32.mxu1 %vm1042_vm1, %v1028_v48  ;;  %v2525_v52 = vadd.f32 -1.0, %v3137_v47 }
 0x144   : > { %2798 = vmatmul.mubr.msk.f32.vlgmr.msra.gmra.mrb[8].mxu1 %vm1042_vm1, %v1029_v51  ;;  %v2524_v55 = vadd.f32 -1.0, %v3139_v50 }
 0x145   : > { %3018 = vmatpush3.bf16.msra.mxu1 %v3546_v46  ;;  %v1031_v60 = vsel %vm991_vm5, %v3559_v5, %v2525_v52  ;;  %v701_v46 = vld [vmem:[%s4090_s9 + $0x38] sm:$0xff] }
 0x146   : > { %v3141_v56 = vpop.eup %3140  ;;  %v1030_v57 = vsel %vm990_vm4, %v3561_v7, %v2524_v55  ;;  %3020 = vmatprep.subr.bf16.mxu1 %v3019_v49  ;;  %v3027_v2 = vpack.c.bf16 %v701_v46, %v700_v62  ;;  %v703_v7 = vld [vmem:[%s4090_s9 + $0x48] sm:$0xff] }
 0x147   : > { %v3143_v59 = vpop.eup %3142  ;;  %2800 = vmatprep.mubr.msk.f32.mxu1 %vm1042_vm1, %v1030_v57  ;;  %v2527_v61 = vadd.f32 -1.0, %v3141_v56  ;;  %v3031_v10 = vpack.c.bf16 %v703_v7, %v702_v6 }
 0x148   : > { %2801 = vmatmul.mubr.msk.f32.gmra.mrb[10].mxu1 %vm1042_vm1, %v1031_v60  ;;  %v2526_v63 = vadd.f32 -1.0, %v3143_v59 }
 0x149   : > { %3022 = vmatpush3.bf16.msra.mxu1 %v3019_v49  ;;  %v1033_v4 = vsel %vm993_vm7, %v3567_v16, %v2527_v61  ;;  %v706_v16 = vld [vmem:[%s4090_s9 + $0x60] sm:$0xff] }
 0x14a   : > { %v3145_v0 = vpop.eup %3144  ;;  %v1032_v1 = vsel %vm992_vm6, %v3569_v18, %v2526_v63  ;;  %3024 = vmatprep.subr.bf16.mxu1 %v3023_v58  ;;  %v3039_v18 = vpack.c.bf16 %v707_v17, %v706_v16 }
 0x14b   : > { %v3147_v3 = vpop.eup %3146  ;;  %2803 = vmatprep.mubr.msk.f32.mxu1 %vm1042_vm1, %v1032_v1  ;;  %v2529_v5 = vadd.f32 -1.0, %v3145_v0 }
 0x14c   : > { %2804 = vmatmul.mubr.msk.f32.gmra.mrb[12].mxu1 %vm1042_vm1, %v1033_v4  ;;  %v2528_v8 = vadd.f32 -1.0, %v3147_v3 }
 0x14d   : > { %3026 = vmatpush3.bf16.msra.mxu1 %v3023_v58  ;;  %v1035_v11 = vsel %vm995_vm9, %v3575_v26, %v2529_v5 }
 0x14e   : > { %v1034_v9 = vsel %vm994_vm8, %v3577_v28, %v2528_v8  ;;  %3028 = vmatprep.subr.bf16.mxu1 %v3027_v2 }
 0x14f   : > { %2806 = vmatprep.mubr.msk.f32.mxu1 %vm1042_vm1, %v1034_v9 }
 0x150   : > { %2807 = vmatmul.mubr.msk.f32.gmra.mrb[14].mxu1 %vm1042_vm1, %v1035_v11 }
 0x151   : > { %3030 = vmatpush3.bf16.msra.mxu1 %v3027_v2  ;;  %2841 = vmatprep.mubr.f32.mxu1 %v3466_v14  ;;  %v709_v14 = vld [vmem:[%s4090_s9 + $0x78] sm:$0xff] }
 0x152   : > { %3032 = vmatprep.subr.bf16.mxu1 %v3031_v10  ;;  %v3043_v20 = vpack.c.bf16 %v709_v14, %v708_v19  ;;  %v2541_v19 = vld [vmem:[%s4091_s10] ss:$0 sm:$0xff] }
 0x155   : > { %3034 = vmatpush3.bf16.msra.mxu1 %v3031_v10 }
 0x156   : > { %3036 = vmatprep.subr.bf16.mxu1 %v3035_v15 }
 0x159   : > { %3038 = vmatpush3.bf16.msra.mxu1 %v3035_v15 }
 0x15a   : > { %3040 = vmatprep.subr.bf16.mxu1 %v3039_v18 }
 0x15d   : > { %3042 = vmatpush3.bf16.msra.mxu1 %v3039_v18 }
 0x15e   : > { %3044 = vmatprep.subr.bf16.mxu1 %v3043_v20 }
 0x161   : > { %3046 = vmatpush3.bf16.msra.mxu1 %v3043_v20 }
 0x164   : > { %2842 = vmatmul.mubr.f32.vlgmr.msra.gmra.mrb[16].mxu1 %v3510_v36  ;;  %v712_v36 = vld [vmem:[%s4092_s11 + $0x8] sm:$0xff] }
 0x165   : > { %2844 = vmatprep.mubr.f32.mxu1 %v3513_v37  ;;  %v3047_v22 = vpack.c.bf16 %v712_v36, %v711_v21  ;;  %v713_v37 = vld [vmem:[%s4092_s11 + $0x10] sm:$0xff] }
 0x167   : > { %3048 = vmatprep.subr.bf16.mxu0 %v3047_v22 }
 0x168   : > { %2845 = vmatmul.mubr.f32.gmra.mrb[18].mxu1 %v3518_v38  ;;  %3050 = vmatpush3.bf16.msra.mxu0 %v3047_v22  ;;  %v714_v38 = vld [vmem:[%s4092_s11 + $0x18] sm:$0xff] }
 0x169   : > { %2847 = vmatprep.mubr.f32.mxu1 %v3521_v39  ;;  %v3051_v39 = vpack.c.bf16 %v714_v38, %v713_v37 }
 0x16b   : > { %3052 = vmatprep.subr.bf16.mxu0 %v3051_v39 }
 0x16c   : > { %2848 = vmatmul.mubr.f32.gmra.mrb[20].mxu1 %v3526_v40  ;;  %3054 = vmatpush3.bf16.msra.mxu0 %v3051_v39  ;;  %v715_v40 = vld [vmem:[%s4092_s11 + $0x20] sm:$0xff] }
 0x16d   : > { %2850 = vmatprep.mubr.f32.mxu1 %v3529_v41  ;;  %v716_v41 = vld [vmem:[%s4092_s11 + $0x28] sm:$0xff] }
 0x170   : > { %2851 = vmatmul.mubr.f32.gmra.mrb[22].mxu1 %v3534_v42  ;;  %v3055_v42 = vpack.c.bf16 %v716_v41, %v715_v40 }
 0x172   : > { %3056 = vmatprep.subr.bf16.mxu0 %v3055_v42 }
 0x173   : > { %3058 = vmatpush3.bf16.msra.mxu0 %v3055_v42 }
 0x174   : > { %3060 = vmatprep.subr.bf16.mxu0 %v3059_v25 }
 0x177   : > { %3062 = vmatpush3.bf16.msra.mxu0 %v3059_v25 }
 0x1a1   : > { %v1189_v26 = vpop.permute.xlu0 %1188 }
 0x1a5   : > { %v1193_v29 = vpop.permute.xlu1 %1192  ;;  %v1191_v34 = vpop.permute.xlu0 %1190 }
 0x1a9   : > { %v1195_v50 = vpop.permute.xlu1 %1194  ;;  %v1197_v60 = vpop.permute.xlu0 %1196 }
 0x1ad   : > { %v1199_v1 = vpop.permute.xlu1 %1198  ;;  %v1201_v11 = vpop.permute.xlu0 %1200 }
 0x1b1   : > { %v1203_v13 = vpop.permute.xlu1 %1202 }
 0x217   : > { %v2799_v28 = vpop.f32.mrb[8].mxu1 }
 0x218   : > { %v1139_v30 = vadd.f32 %v2799_v28, %v2530_v27  ;;  %v1133_v31 = vpop.f32.mrb[9].mxu1 }
 0x219   : > { %v1134_v32 = vadd.f32 %v2530_v27, %v1133_v31 }
 0x21a   : > { %v1173_v33 = vmul.f32 %v1139_v30, %v1139_v30 }
 0x21b   : > { %v1172_v35 = vmul.f32 %v1134_v32, %v1134_v32  ;;  %v2802_v43 = vpop.f32.mrb[10].mxu1 }
 0x21c   : > { %v1149_v44 = vadd.f32 %v2802_v43, %v2530_v27  ;;  %v1143_v45 = vpop.f32.mrb[11].mxu1  ;;  %v3686_v47 = vadd.f32 %v1191_v34, %v1173_v33 }
 0x21d   : > { %v1144_v48 = vadd.f32 %v2530_v27, %v1143_v45  ;;  %v3688_v49 = vadd.f32 %v1189_v26, %v1172_v35 }
 0x21e   : > { %v1175_v51 = vmul.f32 %v1149_v44, %v1149_v44  ;;  %v1223_v52 = vsel %vm1042_vm1, %v3686_v47, 0.0 }
 0x21f   : > { %v1174_v53 = vmul.f32 %v1144_v48, %v1144_v48  ;;  %1224 = vadd.xlane.f32.xlu1 %v1223_v52  ;;  %v2805_v54 = vpop.f32.mrb[12].mxu1  ;;  %v1220_v55 = vsel %vm1042_vm1, %v3688_v49, 0.0 }
 0x220   : > { %v1159_v56 = vadd.f32 %v2805_v54, %v2530_v27  ;;  %v1153_v57 = vpop.f32.mrb[13].mxu1  ;;  %1221 = vadd.xlane.f32.xlu0 %v1220_v55  ;;  %v3696_v61 = vadd.f32 %v1195_v50, %v1175_v51 }
 0x221   : > { %v1154_v58 = vadd.f32 %v2530_v27, %v1153_v57  ;;  %v3694_v59 = vadd.f32 %v1193_v29, %v1174_v53 }
 0x222   : > { %v1177_v62 = vmul.f32 %v1159_v56, %v1159_v56  ;;  %v1229_v6 = vsel %vm1042_vm1, %v3696_v61, 0.0 }
 0x223   : > { %v1176_v46 = vmul.f32 %v1154_v58, %v1154_v58  ;;  %v2808_v63 = vpop.f32.mrb[14].mxu1  ;;  %v1226_v0 = vsel %vm1042_vm1, %v3694_v59, 0.0 }
 0x224   : > { %v1169_v2 = vadd.f32 %v2808_v63, %v2530_v27  ;;  %v1163_v3 = vpop.f32.mrb[15].mxu1  ;;  %1227 = vadd.xlane.f32.xlu0 %v1226_v0  ;;  %v3706_v10 = vadd.f32 %v1199_v1, %v1177_v62  ;;  %v722_v0 = vld [vmem:[%s4096_s15] sm:$0xff]  ;;  %v723_v1 = vld [vmem:[%s4096_s15 + $0x8] sm:$0xff] }
 0x225   : > { %v1164_v4 = vadd.f32 %v2530_v27, %v1163_v3  ;;  %v3700_v5 = vadd.f32 %v1197_v60, %v1176_v46 }
 0x226   : > { %v1179_v7 = vmul.f32 %v1169_v2, %v1169_v2  ;;  %v1235_v16 = vsel %vm1042_vm1, %v3706_v10, 0.0  ;;  %v724_v2 = vld [vmem:[%s4096_s15 + $0x10] sm:$0xff] }
 0x227   : > { %v1178_v8 = vmul.f32 %v1164_v4, %v1164_v4  ;;  %v1232_v9 = vsel %vm1042_vm1, %v3700_v5, 0.0  ;;  %v3063_v4 = vpack.c.bf16 %v723_v1, %v722_v0 }
 0x228   : > { %1233 = vadd.xlane.f32.xlu1 %v1232_v9  ;;  %1230 = vadd.xlane.f32.xlu0 %v1229_v6  ;;  %v3714_v17 = vadd.f32 %v1203_v13, %v1179_v7  ;;  %v725_v6 = vld [vmem:[%s4096_s15 + $0x18] sm:$0xff] }
 0x229   : > { %v3708_v12 = vadd.f32 %v1201_v11, %v1178_v8  ;;  %v3067_v8 = vpack.c.bf16 %v725_v6, %v724_v2  ;;  %3064 = vmatprep.subr.bf16.mxu0 %v3063_v4  ;;  %3080 = vmatprep.subr.bf16.mxu1 %v3063_v4  ;;  %v2550_v6 = vld [vmem:[%s4093_s12] ss:$0 sm:$0xff] }
 0x22a   : > { %v1241_v18 = vsel %vm1042_vm1, %v3714_v17, 0.0  ;;  %3082 = vmatpush3.bf16.msra.mxu1 %v3063_v4 }
 0x22b   : > { %v1238_v15 = vsel %vm1042_vm1, %v3708_v12, 0.0  ;;  %3084 = vmatprep.subr.bf16.mxu1 %v3067_v8 }
 0x22c   : > { %1239 = vadd.xlane.f32.xlu1 %v1238_v15  ;;  %1236 = vadd.xlane.f32.xlu0 %v1235_v16 }
 0x22e   : > { %3086 = vmatpush3.bf16.msra.mxu1 %v3067_v8 }
 0x230   : > { %1242 = vadd.xlane.f32.xlu0 %v1241_v18 }
 0x237   : > { %v2843_v14 = vpop.f32.mrb[16].mxu1 }
 0x238   : > { %v1527_v20 = vadd.f32 %v2843_v14, %v2541_v19  ;;  %v1521_v21 = vpop.f32.mrb[17].mxu1 }
 0x239   : > { %v1522_v36 = vadd.f32 %v2541_v19, %v1521_v21 }
 0x23a   : > { %v1569_v22 = vmin.f32 %v1527_v20, 0.0  ;;  %vm1561_vm10 = vcmp.gt.f32.partialorder %v1527_v20, 0.0 }
 0x23b   : > { %v1568_v37 = vmin.f32 %v1522_v36, 0.0  ;;  %v2846_v38 = vpop.f32.mrb[18].mxu1  ;;  %vm1560_vm11 = vcmp.gt.f32.partialorder %v1522_v36, 0.0 }
 0x23c   : > { %v1578_v39 = vmul.f32 1.442695, %v1569_v22  ;;  %v3721_v40 = vadd.f32 %v2846_v38, %v2541_v19  ;;  %v1531_v41 = vpop.f32.mrb[19].mxu1  ;;  %v726_v38 = vld [vmem:[%s4096_s15 + $0x20] sm:$0xff] }
 0x23d   : > { %v1576_v42 = vmul.f32 1.442695, %v1568_v37  ;;  %v3723_v23 = vadd.f32 %v2541_v19, %v1531_v41  ;;  %1760 = vrot.lane.b32.xlu1 %v1522_v36, %s3270_s22  ;;  %v728_v41 = vld [vmem:[%s4096_s15 + $0x30] sm:$0xff] }
 0x23e   : > { %3148 = vpow2.f32 %v1578_v39  ;;  %v1571_v24 = vmin.f32 %v3721_v40, 0.0  ;;  %vm1563_vm13 = vcmp.gt.f32.partialorder %v3721_v40, 0.0  ;;  %v727_v39 = vld [vmem:[%s4096_s15 + $0x28] sm:$0xff] }
 0x23f   : > { %3150 = vpow2.f32 %v1576_v42  ;;  %v1570_v25 = vmin.f32 %v3723_v23, 0.0  ;;  %v2849_v26 = vpop.f32.mrb[20].mxu1  ;;  %vm1562_vm14 = vcmp.gt.f32.partialorder %v3723_v23, 0.0  ;;  %v729_v42 = vld [vmem:[%s4096_s15 + $0x38] sm:$0xff] }
 0x240   : > { %v1582_v27 = vmul.f32 1.442695, %v1571_v24  ;;  %v3728_v28 = vadd.f32 %v2849_v26, %v2541_v19  ;;  %v1541_v29 = vpop.f32.mrb[21].mxu1 }
 0x241   : > { %v1580_v30 = vmul.f32 1.442695, %v1570_v25  ;;  %v3730_v31 = vadd.f32 %v2541_v19, %v1541_v29  ;;  %1764 = vrot.lane.b32.xlu1 %v3723_v23, %s3270_s22 }
 0x242   : > { %3152 = vpow2.f32 %v1582_v27  ;;  %v1573_v32 = vmin.f32 %v3728_v28, 0.0  ;;  %vm1565_vm15 = vcmp.gt.f32.partialorder %v3728_v28, 0.0 }
 0x243   : > { %3154 = vpow2.f32 %v1580_v30  ;;  %v1572_v33 = vmin.f32 %v3730_v31, 0.0  ;;  %v2852_v34 = vpop.f32.mrb[22].mxu1  ;;  %vm1564_vm0 = vcmp.gt.f32.partialorder %v3730_v31, 0.0 }
 0x244   : > { %v1586_v35 = vmul.f32 1.442695, %v1573_v32  ;;  %v3736_v43 = vadd.f32 %v2852_v34, %v2541_v19  ;;  %v1551_v44 = vpop.f32.mrb[23].mxu1 }
 0x245   : > { %v1584_v45 = vmul.f32 1.442695, %v1572_v33  ;;  %v3738_v48 = vadd.f32 %v2541_v19, %v1551_v44  ;;  %1766 = vrot.lane.b32.xlu1 %v3721_v40, %s3270_s22 }
 0x246   : > { %3156 = vpow2.f32 %v1586_v35  ;;  %v1575_v50 = vmin.f32 %v3736_v43, 0.0  ;;  %1762 = vrot.lane.b32.xlu0 %v1527_v20, %s3270_s22  ;;  %vm1567_vm2 = vcmp.gt.f32.partialorder %v3736_v43, 0.0 }
 0x247   : > { %3158 = vpow2.f32 %v1584_v45  ;;  %v1574_v51 = vmin.f32 %v3738_v48, 0.0  ;;  %vm1566_vm3 = vcmp.gt.f32.partialorder %v3738_v48, 0.0 }
 0x248   : > { %v3149_v52 = vpop.eup %3148  ;;  %v1590_v53 = vmul.f32 1.442695, %v1575_v50 }
 0x249   : > { %v3151_v54 = vpop.eup %3150  ;;  %v2543_v55 = vadd.f32 -1.0, %v3149_v52  ;;  %v1588_v56 = vmul.f32 1.442695, %v1574_v51  ;;  %1770 = vrot.lane.b32.xlu1 %v3728_v28, %s3270_s22 }
 0x24a   : > { %3160 = vpow2.f32 %v1590_v53  ;;  %v2542_v57 = vadd.f32 -1.0, %v3151_v54  ;;  %1768 = vrot.lane.b32.xlu0 %v3730_v31, %s3270_s22 }
 0x24b   : > { %3162 = vpow2.f32 %v1588_v56  ;;  %v1601_v58 = vsel %vm1561_vm10, %v1527_v20, %v2543_v55 }
 0x24c   : > { %v3153_v60 = vpop.eup %3152  ;;  %v1600_v62 = vsel %vm1560_vm11, %v1522_v36, %v2542_v57 }
 0x24d   : > { %v3155_v46 = vpop.eup %3154  ;;  %2869 = vmatprep.mubr.msk.f32.mxu0 %vm1614_vm12, %v1600_v62  ;;  %v2545_v63 = vadd.f32 -1.0, %v3153_v60  ;;  %1774 = vrot.lane.b32.xlu1 %v3736_v43, %s3270_s22 }
 0x24e   : > { %2870 = vmatmul.mubr.msk.f32.vlgmr.msra.gmra.mrb[8].mxu0 %vm1614_vm12, %v1601_v58  ;;  %v2544_v3 = vadd.f32 -1.0, %v3155_v46  ;;  %1772 = vrot.lane.b32.xlu0 %v3738_v48, %s3270_s22 }
 0x24f   : > { %v1603_v7 = vsel %vm1563_vm13, %v3721_v40, %v2545_v63  ;;  %3066 = vmatpush3.bf16.msra.mxu0 %v3063_v4  ;;  %v3071_v40 = vpack.c.bf16 %v727_v39, %v726_v38 }
 0x250   : > { %v3157_v9 = vpop.eup %3156  ;;  %v1602_v11 = vsel %vm1562_vm14, %v3723_v23, %v2544_v3  ;;  %3068 = vmatprep.subr.bf16.mxu0 %v3067_v8  ;;  %v3075_v23 = vpack.c.bf16 %v729_v42, %v728_v41 }
 0x251   : > { %v3159_v13 = vpop.eup %3158  ;;  %2872 = vmatprep.mubr.msk.f32.mxu0 %vm1614_vm12, %v1602_v11  ;;  %v2547_v15 = vadd.f32 -1.0, %v3157_v9  ;;  %3088 = vmatprep.subr.bf16.mxu1 %v3071_v40 }
 0x252   : > { %2873 = vmatmul.mubr.msk.f32.gmra.mrb[10].mxu0 %vm1614_vm12, %v1603_v7  ;;  %v2546_v16 = vadd.f32 -1.0, %v3159_v13  ;;  %3090 = vmatpush3.bf16.msra.mxu1 %v3071_v40 }
 0x253   : > { %v1605_v18 = vsel %vm1565_vm15, %v3728_v28, %v2547_v15  ;;  %3070 = vmatpush3.bf16.msra.mxu0 %v3067_v8  ;;  %3092 = vmatprep.subr.bf16.mxu1 %v3075_v23 }
 0x254   : > { %v3161_v19 = vpop.eup %3160  ;;  %v1604_v14 = vsel %vm1564_vm0, %v3730_v31, %v2546_v16  ;;  %3072 = vmatprep.subr.bf16.mxu0 %v3071_v40 }
 0x255   : > { %v3163_v20 = vpop.eup %3162  ;;  %2875 = vmatprep.mubr.msk.f32.mxu0 %vm1614_vm12, %v1604_v14  ;;  %v2549_v21 = vadd.f32 -1.0, %v3161_v19 }
 0x256   : > { %2876 = vmatmul.mubr.msk.f32.gmra.mrb[12].mxu0 %vm1614_vm12, %v1605_v18  ;;  %v2548_v36 = vadd.f32 -1.0, %v3163_v20  ;;  %3094 = vmatpush3.bf16.msra.mxu1 %v3075_v23 }
 0x257   : > { %v1607_v22 = vsel %vm1567_vm2, %v3736_v43, %v2549_v21  ;;  %3074 = vmatpush3.bf16.msra.mxu0 %v3071_v40 }
 0x258   : > { %v1606_v37 = vsel %vm1566_vm3, %v3738_v48, %v2548_v36  ;;  %3076 = vmatprep.subr.bf16.mxu0 %v3075_v23 }
 0x259   : > { %2878 = vmatprep.mubr.msk.f32.mxu0 %vm1614_vm12, %v1606_v37 }
 0x25a   : > { %2879 = vmatmul.mubr.msk.f32.gmra.mrb[14].mxu0 %vm1614_vm12, %v1607_v22 }
 0x25b   : > { %3078 = vmatpush3.bf16.msra.mxu0 %v3075_v23 }
 0x2ac   : > { %v1225_v24 = vpop.xlane.xlu1 %1224 }
 0x2ad   : > { %v1246_v25 = vmul.f32 0.125, %v1225_v24  ;;  %v1222_v26 = vpop.xlane.xlu0 %1221 }
 0x2ae   : > { %v1245_v27 = vmul.f32 0.125, %v1222_v26 }
 0x2af   : > { %v3798_v28 = vsub.f32 %v3686_v47, %v1246_v25 }
 0x2b0   : > { %v3801_v29 = vsub.f32 %v3688_v49, %v1245_v27 }
 0x2b1   : > { %v1228_v30 = vpop.xlane.xlu0 %1227  ;;  %v1262_v31 = vmul.f32 %v3798_v28, %v3798_v28 }
 0x2b2   : > { %v1247_v32 = vmul.f32 0.125, %v1228_v30  ;;  %v1261_v33 = vmul.f32 %v3801_v29, %v3801_v29 }
 0x2b3   : > { %v1272_v34 = vsel %vm1042_vm1, %v1262_v31, 0.0 }
 0x2b4   : > { %v3809_v35 = vsub.f32 %v3694_v59, %v1247_v32  ;;  %1273 = vadd.xlane.f32.xlu1 %v1272_v34  ;;  %v1269_v47 = vsel %vm1042_vm1, %v1261_v33, 0.0 }
 0x2b5   : > { %v1234_v43 = vpop.xlane.xlu1 %1233  ;;  %1270 = vadd.xlane.f32.xlu0 %v1269_v47  ;;  %v1231_v49 = vpop.xlane.xlu0 %1230 }
 0x2b6   : > { %v1249_v44 = vmul.f32 0.125, %v1234_v43  ;;  %v1248_v45 = vmul.f32 0.125, %v1231_v49  ;;  %v1263_v48 = vmul.f32 %v3809_v35, %v3809_v35 }
 0x2b8   : > { %v3815_v50 = vsub.f32 %v3700_v5, %v1249_v44  ;;  %v3818_v51 = vsub.f32 %v3696_v61, %v1248_v45  ;;  %v1275_v59 = vsel %vm1042_vm1, %v1263_v48, 0.0 }
 0x2b9   : > { %v1240_v52 = vpop.xlane.xlu1 %1239  ;;  %1276 = vadd.xlane.f32.xlu0 %v1275_v59  ;;  %v1237_v53 = vpop.xlane.xlu0 %1236 }
 0x2ba   : > { %v1251_v54 = vmul.f32 0.125, %v1240_v52  ;;  %v1250_v55 = vmul.f32 0.125, %v1237_v53  ;;  %v1265_v56 = vmul.f32 %v3815_v50, %v3815_v50  ;;  %v1264_v57 = vmul.f32 %v3818_v51, %v3818_v51 }
 0x2bc   : > { %v3826_v58 = vsub.f32 %v3708_v12, %v1251_v54  ;;  %v3829_v5 = vsub.f32 %v3706_v10, %v1250_v55  ;;  %v1281_v61 = vsel %vm1042_vm1, %v1265_v56, 0.0  ;;  %v1278_v60 = vsel %vm1042_vm1, %v1264_v57, 0.0 }
 0x2bd   : > { %1282 = vadd.xlane.f32.xlu1 %v1281_v61  ;;  %1279 = vadd.xlane.f32.xlu0 %v1278_v60  ;;  %v1243_v62 = vpop.xlane.xlu0 %1242  ;;  %v1761_v4 = vpop.permute.xlu1 %1760 }
 0x2be   : > { %v1252_v46 = vmul.f32 0.125, %v1243_v62  ;;  %v1267_v63 = vmul.f32 %v3826_v58, %v3826_v58  ;;  %v1266_v0 = vmul.f32 %v3829_v5, %v3829_v5 }
 0x2c0   : > { %v3838_v12 = vsub.f32 %v3714_v17, %v1252_v46  ;;  %v1287_v10 = vsel %vm1042_vm1, %v1267_v63, 0.0  ;;  %v1284_v1 = vsel %vm1042_vm1, %v1266_v0, 0.0 }
 0x2c1   : > { %1288 = vadd.xlane.f32.xlu1 %v1287_v10  ;;  %1285 = vadd.xlane.f32.xlu0 %v1284_v1  ;;  %v1765_v9 = vpop.permute.xlu1 %1764  ;;  %v1763_v14 = vpop.permute.xlu0 %1762 }
 0x2c2   : > { %v1268_v2 = vmul.f32 %v3838_v12, %v3838_v12 }
 0x2c4   : > { %v1290_v3 = vsel %vm1042_vm1, %v1268_v2, 0.0 }
 0x2c5   : > { %1291 = vadd.xlane.f32.xlu0 %v1290_v3  ;;  %v1767_v37 = vpop.permute.xlu1 %1766  ;;  %v1769_v24 = vpop.permute.xlu0 %1768 }
 0x2c9   : > { %v1771_v27 = vpop.permute.xlu1 %1770  ;;  %v1773_v45 = vpop.permute.xlu0 %1772 }
 0x2cd   : > { %v1775_v48 = vpop.permute.xlu1 %1774 }
 0x321   : > { %v2871_v7 = vpop.f32.mrb[8].mxu0 }
 0x322   : > { %v1711_v17 = vadd.f32 %v2871_v7, %v2550_v6  ;;  %v1705_v8 = vpop.f32.mrb[9].mxu0 }
 0x323   : > { %v1706_v11 = vadd.f32 %v2550_v6, %v1705_v8 }
 0x324   : > { %v1745_v13 = vmul.f32 %v1711_v17, %v1711_v17 }
 0x325   : > { %v1744_v15 = vmul.f32 %v1706_v11, %v1706_v11  ;;  %v2874_v16 = vpop.f32.mrb[10].mxu0 }
 0x326   : > { %v1721_v18 = vadd.f32 %v2874_v16, %v2550_v6  ;;  %v1715_v19 = vpop.f32.mrb[11].mxu0  ;;  %v3850_v36 = vadd.f32 %v1763_v14, %v1745_v13 }
 0x327   : > { %v3848_v20 = vadd.f32 %v1761_v4, %v1744_v15  ;;  %v1716_v21 = vadd.f32 %v2550_v6, %v1715_v19  ;;  %v2540_v19 = vld [vmem:[%s4089_s8] ss:$0 sm:$0xff] }
 0x328   : > { %v1747_v22 = vmul.f32 %v1721_v18, %v1721_v18 }
 0x329   : > { %v1746_v38 = vmul.f32 %v1716_v21, %v1716_v21  ;;  %v2877_v39 = vpop.f32.mrb[12].mxu0  ;;  %2897 = vmatprep.mubr.msk.f32.mxu0 %vm1614_vm12, %v3848_v20 }
 0x32a   : > { %v1731_v40 = vadd.f32 %v2877_v39, %v2550_v6  ;;  %v1725_v41 = vpop.f32.mrb[13].mxu0  ;;  %2898 = vmatmul.mubr.msk.f32.vlgmr.msra.gmra.mrb[16].mxu0 %vm1614_vm12, %v3850_v36  ;;  %v3858_v25 = vadd.f32 %v1767_v37, %v1747_v22 }
 0x32b   : > { %v3856_v42 = vadd.f32 %v1765_v9, %v1746_v38  ;;  %v1726_v23 = vadd.f32 %v2550_v6, %v1725_v41  ;;  %v2539_v9 = vld [vmem:[#allocation2] ss:$0 sm:$0xff] }
 0x32c   : > { %v1749_v26 = vmul.f32 %v1731_v40, %v1731_v40 }
 0x32d   : > { %v1748_v30 = vmul.f32 %v1726_v23, %v1726_v23  ;;  %v2880_v31 = vpop.f32.mrb[14].mxu0  ;;  %2900 = vmatprep.mubr.msk.f32.mxu0 %vm1614_vm12, %v3856_v42 }
 0x32e   : > { %v1741_v32 = vadd.f32 %v2880_v31, %v2550_v6  ;;  %v1735_v33 = vpop.f32.mrb[15].mxu0  ;;  %2901 = vmatmul.mubr.msk.f32.gmra.mrb[18].mxu0 %vm1614_vm12, %v3858_v25  ;;  %v3866_v43 = vadd.f32 %v1771_v27, %v1749_v26 }
 0x32f   : > { %v3864_v34 = vadd.f32 %v1769_v24, %v1748_v30  ;;  %v1736_v47 = vadd.f32 %v2550_v6, %v1735_v33 }
 0x330   : > { %v1751_v49 = vmul.f32 %v1741_v32, %v1741_v32 }
 0x331   : > { %v1750_v44 = vmul.f32 %v1736_v47, %v1736_v47  ;;  %2903 = vmatprep.mubr.msk.f32.mxu0 %vm1614_vm12, %v3864_v34 }
 0x332   : > { %2904 = vmatmul.mubr.msk.f32.gmra.mrb[20].mxu0 %vm1614_vm12, %v3866_v43  ;;  %v3874_v52 = vadd.f32 %v1775_v48, %v1751_v49 }
 0x333   : > { %v3872_v59 = vadd.f32 %v1773_v45, %v1750_v44 }
 0x335   : > { %2906 = vmatprep.mubr.msk.f32.mxu0 %vm1614_vm12, %v3872_v59 }
 0x336   : > { %2907 = vmatmul.mubr.msk.f32.gmra.mrb[22].mxu0 %vm1614_vm12, %v3874_v52 }
 0x341   : > { %v1274_v53 = vpop.xlane.xlu1 %1273 }
 0x342   : > { %v1294_v54 = vmul.f32 0.125, %v1274_v53  ;;  %v1271_v55 = vpop.xlane.xlu0 %1270 }
 0x343   : > { %v1293_v56 = vmul.f32 0.125, %v1271_v55 }
 0x344   : > { %v1302_v57 = vadd.f32 1e-05, %v1294_v54 }
 0x345   : > { %v1301_v61 = vadd.f32 1e-05, %v1293_v56 }
 0x346   : > { %3164 = vrsqrt.f32 %v1302_v57  ;;  %v1277_v60 = vpop.xlane.xlu0 %1276 }
 0x347   : > { %3166 = vrsqrt.f32 %v1301_v61  ;;  %v1295_v62 = vmul.f32 0.125, %v1277_v60 }
 0x349   : > { %v1303_v46 = vadd.f32 1e-05, %v1295_v62 }
 0x34a   : > { %v1283_v63 = vpop.xlane.xlu1 %1282  ;;  %v1280_v0 = vpop.xlane.xlu0 %1279 }
 0x34b   : > { %3168 = vrsqrt.f32 %v1303_v46  ;;  %v1297_v10 = vmul.f32 0.125, %v1283_v63  ;;  %v1296_v1 = vmul.f32 0.125, %v1280_v0 }
 0x34d   : > { %v1305_v2 = vadd.f32 1e-05, %v1297_v10  ;;  %v1304_v3 = vadd.f32 1e-05, %v1296_v1 }
 0x34e   : > { %v1289_v4 = vpop.xlane.xlu1 %1288  ;;  %v1286_v6 = vpop.xlane.xlu0 %1285 }
 0x34f   : > { %3170 = vrsqrt.f32 %v1305_v2  ;;  %v1299_v7 = vmul.f32 0.125, %v1289_v4  ;;  %v1298_v17 = vmul.f32 0.125, %v1286_v6 }
 0x350   : > { %v3165_v8 = vpop.eup %3164  ;;  %3172 = vrsqrt.f32 %v1304_v3 }
 0x351   : > { %v3167_v11 = vpop.eup %3166  ;;  %v1307_v13 = vadd.f32 1e-05, %v1299_v7  ;;  %v1306_v15 = vadd.f32 1e-05, %v1298_v17  ;;  %v1318_v16 = vmul.f32 %v3165_v8, %v3798_v28 }
 0x352   : > { %v1292_v18 = vpop.xlane.xlu0 %1291  ;;  %v1317_v14 = vmul.f32 %v3167_v11, %v3801_v29 }
 0x353   : > { %3174 = vrsqrt.f32 %v1307_v13  ;;  %v1300_v21 = vmul.f32 0.125, %v1292_v18  ;;  %v1332_v22 = vmul.f32 %v2539_v9, %v1318_v16 }
 0x354   : > { %3176 = vrsqrt.f32 %v1306_v15  ;;  %v1331_v37 = vmul.f32 %v2539_v9, %v1317_v14 }
 0x355   : > { %v3169_v38 = vpop.eup %3168  ;;  %v1308_v39 = vadd.f32 1e-05, %v1300_v21  ;;  %v1346_v40 = vadd.f32 %v2540_v19, %v1332_v22 }
 0x356   : > { %v1345_v41 = vadd.f32 %v2540_v19, %v1331_v37  ;;  %v1319_v23 = vmul.f32 %v3169_v38, %v3809_v35 }
 0x357   : > { %3178 = vrsqrt.f32 %v1308_v39  ;;  %v1356_v28 = vsel %vm1042_vm1, %v1346_v40, -inf }
 0x358   : > { %1357 = vmax.xlane.f32.xlu0 %v1356_v28  ;;  %v1353_v24 = vsel %vm1042_vm1, %v1345_v41, -inf  ;;  %v1333_v26 = vmul.f32 %v2539_v9, %v1319_v23 }
 0x359   : > { %v3171_v27 = vpop.eup %3170  ;;  %1354 = vmax.xlane.f32.xlu1 %v1353_v24 }
 0x35a   : > { %v3173_v29 = vpop.eup %3172  ;;  %v1347_v30 = vadd.f32 %v2540_v19, %v1333_v26  ;;  %v1321_v31 = vmul.f32 %v3171_v27, %v3815_v50 }
 0x35b   : > { %v1320_v32 = vmul.f32 %v3173_v29, %v3818_v51 }
 0x35c   : > { %v1359_v33 = vsel %vm1042_vm1, %v1347_v30, -inf  ;;  %v1335_v47 = vmul.f32 %v2539_v9, %v1321_v31 }
 0x35d   : > { %v3175_v49 = vpop.eup %3174  ;;  %1360 = vmax.xlane.f32.xlu1 %v1359_v33  ;;  %v1334_v35 = vmul.f32 %v2539_v9, %v1320_v32 }
 0x35e   : > { %v3177_v44 = vpop.eup %3176  ;;  %v1349_v45 = vadd.f32 %v2540_v19, %v1335_v47  ;;  %v1323_v48 = vmul.f32 %v3175_v49, %v3826_v58 }
 0x35f   : > { %v1348_v53 = vadd.f32 %v2540_v19, %v1334_v35  ;;  %v1322_v54 = vmul.f32 %v3177_v44, %v3829_v5 }
 0x360   : > { %v1365_v55 = vsel %vm1042_vm1, %v1349_v45, -inf  ;;  %v1337_v56 = vmul.f32 %v2539_v9, %v1323_v48 }
 0x361   : > { %v3179_v57 = vpop.eup %3178  ;;  %1366 = vmax.xlane.f32.xlu1 %v1365_v55  ;;  %v1362_v50 = vsel %vm1042_vm1, %v1348_v53, -inf  ;;  %v1336_v51 = vmul.f32 %v2539_v9, %v1322_v54 }
 0x362   : > { %1363 = vmax.xlane.f32.xlu0 %v1362_v50  ;;  %v1351_v61 = vadd.f32 %v2540_v19, %v1337_v56  ;;  %v1324_v60 = vmul.f32 %v3179_v57, %v3838_v12 }
 0x363   : > { %v1350_v62 = vadd.f32 %v2540_v19, %v1336_v51 }
 0x364   : > { %v1371_v46 = vsel %vm1042_vm1, %v1351_v61, -inf  ;;  %v1338_v63 = vmul.f32 %v2539_v9, %v1324_v60 }
 0x365   : > { %1372 = vmax.xlane.f32.xlu1 %v1371_v46  ;;  %v1368_v58 = vsel %vm1042_vm1, %v1350_v62, -inf }
 0x366   : > { %1369 = vmax.xlane.f32.xlu0 %v1368_v58  ;;  %v1352_v5 = vadd.f32 %v2540_v19, %v1338_v63 }
 0x368   : > { %v1374_v0 = vsel %vm1042_vm1, %v1352_v5, -inf }
 0x36a   : > { %1375 = vmax.xlane.f32.xlu0 %v1374_v0 }
 0x3e5   : > { %v1358_v10 = vpop.xlane.xlu0 %1357 }
 0x3e6   : > { %v1378_v1 = vsub.f32 %v1346_v40, %v1358_v10  ;;  %v1355_v2 = vpop.xlane.xlu1 %1354 }
 0x3e7   : > { %v1377_v3 = vsub.f32 %v1345_v41, %v1355_v2  ;;  %v732_v2 = vld [vmem:[%s4098_s17 + $0x8] sm:$0xff] }
 0x3e8   : > { %v1387_v4 = vmul.f32 1.442695, %v1378_v1 }
 0x3e9   : > { %v1385_v6 = vmul.f32 1.442695, %v1377_v3  ;;  %v733_v3 = vld [vmem:[%s4098_s17 + $0x10] sm:$0xff] }
 0x3ea   : > { %3180 = vpow2.f32 %v1387_v4  ;;  %v1361_v12 = vpop.xlane.xlu1 %1360 }
 0x3eb   : > { %3182 = vpow2.f32 %v1385_v6  ;;  %v1379_v7 = vsub.f32 %v1347_v30, %v1361_v12  ;;  %v734_v6 = vld [vmem:[%s4098_s17 + $0x18] sm:$0xff] }
 0x3ec   : > { %v3099_v12 = vpack.c.bf16 %v734_v6, %v733_v3 }
 0x3ed   : > { %v1389_v17 = vmul.f32 1.442695, %v1379_v7  ;;  %v735_v7 = vld [vmem:[%s4098_s17 + $0x20] sm:$0xff] }
 0x3ee   : > { %v1367_v8 = vpop.xlane.xlu1 %1366 }
 0x3ef   : > { %3184 = vpow2.f32 %v1389_v17  ;;  %v1381_v9 = vsub.f32 %v1349_v45, %v1367_v8  ;;  %v1364_v11 = vpop.xlane.xlu0 %1363  ;;  %v736_v17 = vld [vmem:[%s4098_s17 + $0x28] sm:$0xff] }
 0x3f0   : > { %v1380_v13 = vsub.f32 %v1348_v53, %v1364_v11  ;;  %v3103_v8 = vpack.c.bf16 %v736_v17, %v735_v7 }
 0x3f1   : > { %v1393_v15 = vmul.f32 1.442695, %v1381_v9 }
 0x3f2   : > { %v1391_v16 = vmul.f32 1.442695, %v1380_v13  ;;  %v1373_v18 = vpop.xlane.xlu1 %1372 }
 0x3f3   : > { %3186 = vpow2.f32 %v1393_v15  ;;  %v1383_v19 = vsub.f32 %v1351_v61, %v1373_v18  ;;  %v1370_v14 = vpop.xlane.xlu0 %1369 }
 0x3f4   : > { %v3899_v21 = vpop.eup %3180  ;;  %3188 = vpow2.f32 %v1391_v16  ;;  %v1382_v22 = vsub.f32 %v1350_v62, %v1370_v14 }
 0x3f5   : > { %v3901_v37 = vpop.eup %3182  ;;  %v1397_v38 = vmul.f32 1.442695, %v1383_v19  ;;  %v1404_v39 = vsel %vm1042_vm1, %v3899_v21, 0.0 }
 0x3f6   : > { %v1395_v40 = vmul.f32 1.442695, %v1382_v22  ;;  %1405 = vadd.xlane.f32.xlu0 %v1404_v39  ;;  %v1401_v41 = vsel %vm1042_vm1, %v3901_v37, 0.0 }
 0x3f7   : > { %3190 = vpow2.f32 %v1397_v38  ;;  %v1376_v23 = vpop.xlane.xlu0 %1375  ;;  %1402 = vadd.xlane.f32.xlu1 %v1401_v41 }
 0x3f8   : > { %3192 = vpow2.f32 %v1395_v40  ;;  %v1384_v28 = vsub.f32 %v1352_v5, %v1376_v23 }
 0x3f9   : > { %v3907_v24 = vpop.eup %3184 }
 0x3fa   : > { %v1399_v26 = vmul.f32 1.442695, %v1384_v28  ;;  %v1407_v27 = vsel %vm1042_vm1, %v3907_v24, 0.0 }
 0x3fb   : > { %1408 = vadd.xlane.f32.xlu1 %v1407_v27 }
 0x3fc   : > { %3194 = vpow2.f32 %v1399_v26 }
 0x3fd   : > { %v3911_v29 = vpop.eup %3186  ;;  %v2899_v30 = vpop.f32.mrb[16].mxu0 }
 0x3fe   : > { %v3913_v31 = vpop.eup %3188  ;;  %v3916_v32 = vsub.f32 %v3850_v36, %v2899_v30  ;;  %v1882_v33 = vpop.f32.mrb[17].mxu0  ;;  %v1413_v47 = vsel %vm1042_vm1, %v3911_v29, 0.0 }
 0x3ff   : > { %v3921_v49 = vsub.f32 %v3848_v20, %v1882_v33  ;;  %1414 = vadd.xlane.f32.xlu1 %v1413_v47  ;;  %v1410_v35 = vsel %vm1042_vm1, %v3913_v31, 0.0 }
 0x400   : > { %1411 = vadd.xlane.f32.xlu0 %v1410_v35  ;;  %v1930_v53 = vmul.f32 %v3916_v32, %v3916_v32 }
 0x401   : > { %v3925_v44 = vpop.eup %3190  ;;  %v1929_v45 = vmul.f32 %v3921_v49, %v3921_v49  ;;  %v2902_v48 = vpop.f32.mrb[18].mxu0 }
 0x402   : > { %v3929_v36 = vpop.eup %3192  ;;  %v3934_v54 = vsub.f32 %v3858_v25, %v2902_v48  ;;  %v1892_v20 = vpop.f32.mrb[19].mxu0  ;;  %v1419_v55 = vsel %vm1042_vm1, %v3925_v44, 0.0 }
 0x403   : > { %v3939_v56 = vsub.f32 %v3856_v42, %v1892_v20  ;;  %2925 = vmatprep.mubr.msk.f32.mxu1 %vm1614_vm12, %v1929_v45  ;;  %1420 = vadd.xlane.f32.xlu1 %v1419_v55  ;;  %v1416_v57 = vsel %vm1042_vm1, %v3929_v36, 0.0  ;;  %v737_v55 = vld [vmem:[%s4098_s17 + $0x30] sm:$0xff] }
 0x404   : > { %2926 = vmatmul.mubr.msk.f32.vlgmr.msra.gmra.mrb[24].mxu1 %vm1614_vm12, %v1930_v53  ;;  %1417 = vadd.xlane.f32.xlu0 %v1416_v57  ;;  %v1932_v61 = vmul.f32 %v3934_v54, %v3934_v54  ;;  %v738_v57 = vld [vmem:[%s4098_s17 + $0x38] sm:$0xff] }
 0x405   : > { %v1931_v25 = vmul.f32 %v3939_v56, %v3939_v56  ;;  %v2905_v50 = vpop.f32.mrb[20].mxu0 }
 0x406   : > { %v3947_v51 = vpop.eup %3194  ;;  %v3952_v42 = vsub.f32 %v3866_v43, %v2905_v50  ;;  %v1902_v60 = vpop.f32.mrb[21].mxu0 }
 0x407   : > { %v3955_v62 = vsub.f32 %v3864_v34, %v1902_v60  ;;  %2928 = vmatprep.mubr.msk.f32.mxu1 %vm1614_vm12, %v1931_v25  ;;  %v1422_v46 = vsel %vm1042_vm1, %v3947_v51, 0.0  ;;  %v3107_v25 = vpack.c.bf16 %v738_v57, %v737_v55 }
 0x408   : > { %2929 = vmatmul.mubr.msk.f32.gmra.mrb[26].mxu1 %vm1614_vm12, %v1932_v61  ;;  %1423 = vadd.xlane.f32.xlu0 %v1422_v46  ;;  %v1934_v43 = vmul.f32 %v3952_v42, %v3952_v42 }
 0x409   : > { %v1933_v63 = vmul.f32 %v3955_v62, %v3955_v62  ;;  %v2908_v58 = vpop.f32.mrb[22].mxu0 }
 0x40a   : > { %v3966_v5 = vsub.f32 %v3874_v52, %v2908_v58  ;;  %v1912_v34 = vpop.f32.mrb[23].mxu0  ;;  %v730_v52 = vld [vmem:[%s4097_s16] sm:$0xff] }
 0x40b   : > { %v3969_v0 = vsub.f32 %v3872_v59, %v1912_v34  ;;  %2931 = vmatprep.mubr.msk.f32.mxu1 %vm1614_vm12, %v1933_v63  ;;  %2937 = vmatprep.subr.mxu0 %v730_v52  ;;  %v731_v59 = vld [vmem:[%s4098_s17] sm:$0xff] }
 0x40c   : > { %2932 = vmatmul.mubr.msk.f32.gmra.mrb[28].mxu1 %vm1614_vm12, %v1934_v43  ;;  %v1936_v1 = vmul.f32 %v3966_v5, %v3966_v5  ;;  %2938 = vmatpush3.msra.mxu0 %v730_v52  ;;  %v3095_v4 = vpack.c.bf16 %v732_v2, %v731_v59  ;;  %v2575_v52 = vld [vmem:[%s4094_s13] ss:$0 sm:$0xff] }
 0x40d   : > { %v1935_v10 = vmul.f32 %v3969_v0, %v3969_v0 }
 0x40e   : > { %3096 = vmatprep.subr.bf16.mxu1 %v3095_v4 }
 0x40f   : > { %2934 = vmatprep.mubr.msk.f32.mxu1 %vm1614_vm12, %v1935_v10  ;;  %3098 = vmatpush3.bf16.msra.mxu1 %v3095_v4  ;;  %v2576_v4 = vld [vmem:[%s4095_s14] ss:$0 sm:$0xff] }
 0x410   : > { %2935 = vmatmul.mubr.msk.f32.gmra.mrb[30].mxu1 %vm1614_vm12, %v1936_v1  ;;  %3100 = vmatprep.subr.bf16.mxu1 %v3099_v12 }
 0x413   : > { %3102 = vmatpush3.bf16.msra.mxu1 %v3099_v12 }
 0x414   : > { %3104 = vmatprep.subr.bf16.mxu1 %v3103_v8 }
 0x417   : > { %3106 = vmatpush3.bf16.msra.mxu1 %v3103_v8 }
 0x418   : > { %3108 = vmatprep.subr.bf16.mxu1 %v3107_v25 }
 0x41b   : > { %3110 = vmatpush3.bf16.msra.mxu1 %v3107_v25 }
 0x483   : > { %v1406_v9 = vpop.xlane.xlu0 %1405 }
 0x484   : > { %3196 = vrcp.f32 %v1406_v9  ;;  %v1403_v11 = vpop.xlane.xlu1 %1402 }
 0x485   : > { %3198 = vrcp.f32 %v1403_v11 }
 0x488   : > { %v1409_v13 = vpop.xlane.xlu1 %1408 }
 0x489   : > { %3200 = vrcp.f32 %v1409_v13 }
 0x48c   : > { %v1415_v15 = vpop.xlane.xlu1 %1414 }
 0x48d   : > { %3202 = vrcp.f32 %v1415_v15  ;;  %v1412_v16 = vpop.xlane.xlu0 %1411 }
 0x48e   : > { %v3197_v18 = vpop.eup %3196  ;;  %3204 = vrcp.f32 %v1412_v16 }
 0x48f   : > { %v3199_v19 = vpop.eup %3198  ;;  %v1434_v14 = vmul.f32 %v3197_v18, %v3899_v21 }
 0x490   : > { %v1421_v22 = vpop.xlane.xlu1 %1420  ;;  %v1433_v38 = vmul.f32 %v3199_v19, %v3901_v37 }
 0x491   : > { %1442 = vst.msk [vmem:[%s4004_s2 + $0x8] sm:$0xff] %vm1042_vm1, %v1434_v14  ;;  %3206 = vrcp.f32 %v1421_v22  ;;  %v1418_v39 = vpop.xlane.xlu0 %1417 }
 0x492   : > { %3208 = vrcp.f32 %v1418_v39  ;;  %1441 = vst.msk [vmem:[%s4004_s2] sm:$0xff] %vm1042_vm1, %v1433_v38  ;;  %2939 = vmatprep.mubr.msk.f32.mxu0 %vm1042_vm1, %v1433_v38 }
 0x493   : > { %v3201_v40 = vpop.eup %3200  ;;  %2940 = vmatmul.mubr.msk.f32.vlgmr.msra.gmra.mrb[24].mxu0 %vm1042_vm1, %v1434_v14 }
 0x494   : > { %v1435_v41 = vmul.f32 %v3201_v40, %v3907_v24 }
 0x495   : > { %v1424_v21 = vpop.xlane.xlu0 %1423 }
 0x496   : > { %3210 = vrcp.f32 %v1424_v21  ;;  %1443 = vst.msk [vmem:[%s4004_s2 + $0x10] sm:$0xff] %vm1042_vm1, %v1435_v41  ;;  %2942 = vmatprep.mubr.msk.f32.mxu0 %vm1042_vm1, %v1435_v41 }
 0x497   : > { %v3203_v37 = vpop.eup %3202 }
 0x498   : > { %v3205_v23 = vpop.eup %3204  ;;  %v1437_v28 = vmul.f32 %v3203_v37, %v3911_v29 }
 0x499   : > { %v1436_v26 = vmul.f32 %v3205_v23, %v3913_v31 }
 0x49a   : > { %1445 = vst.msk [vmem:[%s4004_s2 + $0x20] sm:$0xff] %vm1042_vm1, %v1437_v28 }
 0x49b   : > { %v3207_v27 = vpop.eup %3206  ;;  %1444 = vst.msk [vmem:[%s4004_s2 + $0x18] sm:$0xff] %vm1042_vm1, %v1436_v26  ;;  %2943 = vmatmul.mubr.msk.f32.gmra.mrb[26].mxu0 %vm1042_vm1, %v1436_v26 }
 0x49c   : > { %v3209_v24 = vpop.eup %3208  ;;  %2945 = vmatprep.mubr.msk.f32.mxu0 %vm1042_vm1, %v1437_v28  ;;  %v1439_v30 = vmul.f32 %v3207_v27, %v3925_v44 }
 0x49d   : > { %v1438_v33 = vmul.f32 %v3209_v24, %v3929_v36 }
 0x49e   : > { %1447 = vst.msk [vmem:[%s4004_s2 + $0x30] sm:$0xff] %vm1042_vm1, %v1439_v30 }
 0x49f   : > { %1446 = vst.msk [vmem:[%s4004_s2 + $0x28] sm:$0xff] %vm1042_vm1, %v1438_v33  ;;  %2946 = vmatmul.mubr.msk.f32.gmra.mrb[28].mxu0 %vm1042_vm1, %v1438_v33 }
 0x4a0   : > { %v3211_v29 = vpop.eup %3210  ;;  %2948 = vmatprep.mubr.msk.f32.mxu0 %vm1042_vm1, %v1439_v30 }
 0x4a1   : > { %v1440_v31 = vmul.f32 %v3211_v29, %v3947_v51 }
 0x4a3   : > { %1448 = vst.msk [vmem:[%s4004_s2 + $0x38] sm:$0xff] %vm1042_vm1, %v1440_v31  ;;  %2949 = vmatmul.mubr.msk.f32.gmra.mrb[30].mxu0 %vm1042_vm1, %v1440_v31 }
 0x4d7   : > { %v2927_v47 = vpop.f32.mrb[24].mxu1 }
 0x4d8   : > { %v2027_v35 = vpop.f32.mrb[25].mxu1  ;;  %v2033_v50 = vadd.f32 1e-05, %v2927_v47 }
 0x4d9   : > { %v2028_v51 = vadd.f32 1e-05, %v2027_v35 }
 0x4da   : > { %3212 = vrsqrt.f32 %v2033_v50 }
 0x4db   : > { %v2930_v44 = vpop.f32.mrb[26].mxu1  ;;  %3214 = vrsqrt.f32 %v2028_v51 }
 0x4dc   : > { %v2037_v45 = vpop.f32.mrb[27].mxu1  ;;  %v2043_v61 = vadd.f32 1e-05, %v2930_v44 }
 0x4dd   : > { %v2038_v60 = vadd.f32 1e-05, %v2037_v45 }
 0x4de   : > { %3216 = vrsqrt.f32 %v2043_v61 }
 0x4df   : > { %v2933_v48 = vpop.f32.mrb[28].mxu1  ;;  %3218 = vrsqrt.f32 %v2038_v60 }
 0x4e0   : > { %v2047_v36 = vpop.f32.mrb[29].mxu1  ;;  %v2053_v46 = vadd.f32 1e-05, %v2933_v48 }
 0x4e1   : > { %v2048_v63 = vadd.f32 1e-05, %v2047_v36 }
 0x4e2   : > { %3220 = vrsqrt.f32 %v2053_v46 }
 0x4e3   : > { %v2936_v53 = vpop.f32.mrb[30].mxu1  ;;  %3222 = vrsqrt.f32 %v2048_v63 }
 0x4e4   : > { %v2057_v20 = vpop.f32.mrb[31].mxu1  ;;  %v3213_v58 = vpop.eup %3212  ;;  %v2063_v34 = vadd.f32 1e-05, %v2936_v53 }
 0x4e5   : > { %v3215_v43 = vpop.eup %3214  ;;  %v2058_v10 = vadd.f32 1e-05, %v2057_v20  ;;  %v2075_v1 = vmul.f32 %v3213_v58, %v3916_v32 }
 0x4e6   : > { %v2074_v59 = vmul.f32 %v3215_v43, %v3921_v49  ;;  %3224 = vrsqrt.f32 %v2063_v34 }
 0x4e7   : > { %3226 = vrsqrt.f32 %v2058_v10  ;;  %v2089_v2 = vmul.f32 %v2575_v52, %v2075_v1 }
 0x4e8   : > { %v3217_v3 = vpop.eup %3216  ;;  %v2088_v6 = vmul.f32 %v2575_v52, %v2074_v59 }
 0x4e9   : > { %v3219_v12 = vpop.eup %3218  ;;  %v2103_v7 = vadd.f32 %v2576_v4, %v2089_v2  ;;  %v2077_v17 = vmul.f32 %v3217_v3, %v3934_v54 }
 0x4ea   : > { %v2102_v9 = vadd.f32 %v2576_v4, %v2088_v6  ;;  %v2076_v11 = vmul.f32 %v3219_v12, %v3939_v56 }
 0x4eb   : > { %v2091_v18 = vmul.f32 %v2575_v52, %v2077_v17 }
 0x4ec   : > { %v3221_v32 = vpop.eup %3220  ;;  %v2090_v22 = vmul.f32 %v2575_v52, %v2076_v11 }
 0x4ed   : > { %v3223_v13 = vpop.eup %3222  ;;  %v2079_v19 = vmul.f32 %v3221_v32, %v3952_v42  ;;  %v2105_v54 = vadd.f32 %v2576_v4, %v2091_v18 }
 0x4ee   : > { %v2078_v38 = vmul.f32 %v3223_v13, %v3955_v62  ;;  %v2104_v21 = vadd.f32 %v2576_v4, %v2090_v22 }
 0x4ef   : > { %v2093_v40 = vmul.f32 %v2575_v52, %v2079_v19 }
 0x4f0   : > { %v3225_v14 = vpop.eup %3224  ;;  %v2092_v37 = vmul.f32 %v2575_v52, %v2078_v38 }
 0x4f1   : > { %v3227_v39 = vpop.eup %3226  ;;  %v2081_v56 = vmul.f32 %v3225_v14, %v3966_v5  ;;  %v2107_v27 = vadd.f32 %v2576_v4, %v2093_v40 }
 0x4f2   : > { %v2080_v23 = vmul.f32 %v3227_v39, %v3969_v0  ;;  %v2106_v62 = vadd.f32 %v2576_v4, %v2092_v37 }
 0x4f3   : > { %v2095_v24 = vmul.f32 %v2575_v52, %v2081_v56 }
 0x4f4   : > { %v2094_v33 = vmul.f32 %v2575_v52, %v2080_v23 }
 0x4f5   : > { %v2109_v47 = vadd.f32 %v2576_v4, %v2095_v24 }
 0x4f6   : > { %v2108_v0 = vadd.f32 %v2576_v4, %v2094_v33 }
 0x566   : > { %v2941_v8 = vpop.f32.mrb[24].mxu0 }
 0x567   : > { %v2240_v49 = vmul.f32 %v2941_v8, %v2103_v7  ;;  %v2200_v15 = vpop.f32.mrb[25].mxu0 }
 0x568   : > { %v2239_v16 = vmul.f32 %v2200_v15, %v2102_v9 }
 0x56a   : > { %2967 = vmatprep.mubr.msk.f32.mxu1 %vm1614_vm12, %v2239_v16 }
 0x56b   : > { %2968 = vmatmul.mubr.msk.f32.vlgmr.msra.gmra.mrb[32].mxu1 %vm1614_vm12, %v2240_v49 }
 0x56e   : > { %v2944_v41 = vpop.f32.mrb[26].mxu0 }
 0x56f   : > { %v2242_v28 = vmul.f32 %v2944_v41, %v2105_v54  ;;  %v2210_v42 = vpop.f32.mrb[27].mxu0 }
 0x570   : > { %v2241_v26 = vmul.f32 %v2210_v42, %v2104_v21 }
 0x572   : > { %v2947_v30 = vpop.f32.mrb[28].mxu0  ;;  %2970 = vmatprep.mubr.msk.f32.mxu1 %vm1614_vm12, %v2241_v26 }
 0x573   : > { %v2244_v29 = vmul.f32 %v2947_v30, %v2107_v27  ;;  %v2220_v31 = vpop.f32.mrb[29].mxu0  ;;  %2971 = vmatmul.mubr.msk.f32.gmra.mrb[34].mxu1 %vm1614_vm12, %v2242_v28 }
 0x574   : > { %v2243_v5 = vmul.f32 %v2220_v31, %v2106_v62 }
 0x576   : > { %v2950_v35 = vpop.f32.mrb[30].mxu0  ;;  %2973 = vmatprep.mubr.msk.f32.mxu1 %vm1614_vm12, %v2243_v5 }
 0x577   : > { %v2246_v44 = vmul.f32 %v2950_v35, %v2109_v47  ;;  %v2230_v45 = vpop.f32.mrb[31].mxu0  ;;  %2974 = vmatmul.mubr.msk.f32.gmra.mrb[36].mxu1 %vm1614_vm12, %v2244_v29 }
 0x578   : > { %v2245_v48 = vmul.f32 %v2230_v45, %v2108_v0 }
 0x57a   : > { %2976 = vmatprep.mubr.msk.f32.mxu1 %vm1614_vm12, %v2245_v48 }
 0x57b   : > { %2977 = vmatmul.mubr.msk.f32.gmra.mrb[38].mxu1 %vm1614_vm12, %v2246_v44 }
 0x63e   : > { %v2969_v36 = vpop.f32.mrb[32].mxu1 }
 0x63f   : > { %2377 = vst.msk [vmem:[%s647_s24 + $0x8] sm:$0xff] %vm1042_vm1, %v2969_v36  ;;  %v2337_v53 = vpop.f32.mrb[33].mxu1 }
 0x640   : > { %2376 = vst.msk [vmem:[%s647_s24] sm:$0xff] %vm1042_vm1, %v2337_v53 }
 0x646   : > { %v2972_v20 = vpop.f32.mrb[34].mxu1 }
 0x647   : > { %2379 = vst.msk [vmem:[%s647_s24 + $0x18] sm:$0xff] %vm1042_vm1, %v2972_v20  ;;  %v2347_v55 = vpop.f32.mrb[35].mxu1 }
 0x648   : > { %2378 = vst.msk [vmem:[%s647_s24 + $0x10] sm:$0xff] %vm1042_vm1, %v2347_v55 }
 0x64a   : > { %v2975_v57 = vpop.f32.mrb[36].mxu1 }
 0x64b   : > { %2381 = vst.msk [vmem:[%s647_s24 + $0x28] sm:$0xff] %vm1042_vm1, %v2975_v57  ;;  %v2357_v25 = vpop.f32.mrb[37].mxu1 }
 0x64c   : > { %2380 = vst.msk [vmem:[%s647_s24 + $0x20] sm:$0xff] %vm1042_vm1, %v2357_v25 }
 0x64e   : > { %v2978_v50 = vpop.f32.mrb[38].mxu1 }
 0x64f   : > { %2383 = vst.msk [vmem:[%s647_s24 + $0x38] sm:$0xff] %vm1042_vm1, %v2978_v50  ;;  %v2367_v51 = vpop.f32.mrb[39].mxu1 }
 0x650   : > { %2382 = vst.msk [vmem:[%s647_s24 + $0x30] sm:$0xff] %vm1042_vm1, %v2367_v51 }
 0x651 PF: > { %s31_s0 = sadd.s32 1, %s3266_s0  }
 0x652   : > { %p28_p2 = scmp.ge.s32.totalorder %s31_s0, 4  }
 0x654   :  { %30 = sbr.rel (!%p28_p2) target bundleno = 7 (0x7), region = 142 }
 0x65b   :  { %2423 = vsyncpa [#allocation3], 1 }
 0x65c   :  { %2425 = vsyncpa [#allocation3 + $0x1], 1 }

</bundles_post_ra>
